<compile_context>
chip_gen: v7x
topology: tpu7x:2x2x1
jax: 0.10.0
libtpu: 0.0.40
codegen_flags: <defaults>
</compile_context>

<pallas_src>
import jax
import jax.numpy as jnp
from jax.experimental import pallas as pl
from jax.experimental.pallas import tpu as pltpu

_LANE = 128
_VMEM_BUDGET = 40 * 1024 * 1024   # target per-step working set
_VMEM_LIMIT = 48 * 1024 * 1024    # scoped VMEM limit handed to Mosaic


def _round_up(x, m):
    return (x + m - 1) // m * m


# --------------------------------------------------------------------------- #
# Kernel
# --------------------------------------------------------------------------- #
def _mlp_kernel(x_ref, w1_ref, b1_ref, w2_ref, b2_ref, w3_ref, b3_ref,
                w4_ref, b4_ref, o_ref):
    # x tile arrives in f32; cast on-chip to bf16 for the MXU.
    x = x_ref[...].astype(jnp.bfloat16)

    h = jnp.dot(x, w1_ref[...], preferred_element_type=jnp.float32)
    h = jnp.maximum(h + b1_ref[...], 0.0).astype(jnp.bfloat16)

    h = jnp.dot(h, w2_ref[...], preferred_element_type=jnp.float32)
    h = jnp.maximum(h + b2_ref[...], 0.0).astype(jnp.bfloat16)

    h = jnp.dot(h, w3_ref[...], preferred_element_type=jnp.float32)
    h = jnp.maximum(h + b3_ref[...], 0.0).astype(jnp.bfloat16)

    h = jnp.dot(h, w4_ref[...], preferred_element_type=jnp.float32)
    o_ref[...] = (h + b4_ref[...]).astype(o_ref.dtype)


# --------------------------------------------------------------------------- #
# One-time parameter pre-pack (hoisted out of the forward hot path)
# --------------------------------------------------------------------------- #
def prepack_params(params, compute_dtype=jnp.bfloat16):
    """Cast/pad/reshape the nn.Linear parameters once.

    Returns (weights, biases, d_in, num_classes, weight_bytes) where
      weights = (w1, w2, w3, w4) in bf16, w1 padded along K to a multiple of
                128, w4 padded along N to a multiple of 128,
      biases  = (b1, b2, b3, b4) as (1, N) f32 rows (b4 zero-padded).
    """
    (w1, b1), (w2, b2), (w3, b3), (w4, b4) = params
    d_in = int(w1.shape[0])
    num_classes = int(w4.shape[1])
    d_in_pad = _round_up(max(d_in, _LANE), _LANE)
    n_pad = _round_up(max(num_classes, _LANE), _LANE)

    if d_in_pad != d_in:
        w1 = jnp.pad(w1, ((0, d_in_pad - d_in), (0, 0)))
    if n_pad != num_classes:
        w4 = jnp.pad(w4, ((0, 0), (0, n_pad - num_classes)))
        b4 = jnp.pad(b4, (0, n_pad - num_classes))

    weights = tuple(jnp.asarray(w, compute_dtype) for w in (w1, w2, w3, w4))
    biases = tuple(jnp.asarray(b, jnp.float32).reshape(1, -1)
                   for b in (b1, b2, b3, b4))
    weights = jax.block_until_ready(weights)
    biases = jax.block_until_ready(biases)

    weight_bytes = (sum(int(w.size) * w.dtype.itemsize for w in weights)
                    + sum(int(b.size) * b.dtype.itemsize for b in biases))
    return weights, biases, d_in, num_classes, weight_bytes


# --------------------------------------------------------------------------- #
# Tile selection: overhead-amortizing, D_in-aware, >=2 steps when possible
# --------------------------------------------------------------------------- #
def _pick_batch_tile(B, d_in_pad, n_pad, weight_bytes, batch_tile=None):
    if batch_tile is not None:
        tb = max(_LANE, _round_up(batch_tile, _LANE))
    else:
        # Large default tile to amortize the ~0.35 us per-grid-step overhead.
        tb = min(2048, _round_up(B, _LANE))

    # D_in-aware VMEM cap: f32 x tile (double-buffered) + f32 out tile
    # (double-buffered) + ~8 KiB/row inter-layer scratch, on top of the
    # VMEM-resident weights.
    per_row = 2 * d_in_pad * 4 + 2 * n_pad * 4 + 8 * 1024
    avail = max(_VMEM_BUDGET - weight_bytes, per_row * _LANE)
    tb_cap = max(_LANE, (avail // per_row) // _LANE * _LANE)
    tb = min(tb, tb_cap)

    B_pad = _round_up(B, tb)
    # v7x has 2 TensorCores; keep >= 2 parallel grid steps when batch allows.
    if B >= 2 * _LANE and B_pad // tb < 2:
        tb = max(_LANE, (tb // 2) // _LANE * _LANE)
        B_pad = _round_up(B, tb)
    return tb, B_pad


# --------------------------------------------------------------------------- #
# Forward
# --------------------------------------------------------------------------- #
def ann_model_forward(x, packed, *, batch_tile=None):
    """Fused MLP forward. x: (B, input_size) f32. Returns (B, num_classes) f32."""
    weights, biases, d_in, num_classes, weight_bytes = packed
    w1, w2, w3, w4 = weights
    b1, b2, b3, b4 = biases
    d_in_pad = int(w1.shape[0])
    n_pad = int(w4.shape[1])

    B = x.shape[0]
    assert x.shape[1] == d_in, "input feature size mismatch"

    tb, B_pad = _pick_batch_tile(B, d_in_pad, n_pad, weight_bytes, batch_tile)

    pad_rows = B_pad - B
    pad_cols = d_in_pad - d_in
    if pad_rows or pad_cols:
        x = jnp.pad(x, ((0, pad_rows), (0, pad_cols)))
    # x stays f32 here; the kernel casts the tile to bf16 on-chip.

    # Grid-invariant weights/biases: single VMEM-resident copy, not pipelined.
    vmem_resident = pl.BlockSpec(memory_space=pltpu.MemorySpace.VMEM)

    flops = 2 * B_pad * (d_in_pad * 256 + 256 * 512 + 512 * 256 + 256 * n_pad)
    bytes_accessed = (int(x.size) * 4 + weight_bytes + B_pad * n_pad * 4)

    out = pl.pallas_call(
        _mlp_kernel,
        out_shape=jax.ShapeDtypeStruct((B_pad, n_pad), jnp.float32),
        grid_spec=pltpu.PrefetchScalarGridSpec(
            num_scalar_prefetch=0,
            grid=(B_pad // tb,),
            in_specs=[
                pl.BlockSpec((tb, d_in_pad), lambda i: (i, 0)),  # x tile (pipelined)
                vmem_resident, vmem_resident,                    # w1, b1
                vmem_resident, vmem_resident,                    # w2, b2
                vmem_resident, vmem_resident,                    # w3, b3
                vmem_resident, vmem_resident,                    # w4, b4
            ],
            out_specs=pl.BlockSpec((tb, n_pad), lambda i: (i, 0)),
        ),
        compiler_params=pltpu.CompilerParams(
            dimension_semantics=("parallel",),
            vmem_limit_bytes=_VMEM_LIMIT),
        cost_estimate=pl.CostEstimate(
            flops=flops, transcendentals=0, bytes_accessed=bytes_accessed),
    )(x, w1, b1, w2, b2, w3, b3, w4, b4)

    return out[:B, :num_classes]


# --------------------------------------------------------------------------- #
# Init + references
# --------------------------------------------------------------------------- #
def init_params(key, input_size, num_classes):
    """Deterministic init mirroring nn.Linear shapes.
    Weights stored transposed as (in_features, out_features)."""
    dims = [(input_size, 256), (256, 512), (512, 256), (256, num_classes)]
    params = []
    for (d_in, d_out) in dims:
        key, kw, kb = jax.random.split(key, 3)
        bound = 1.0 / jnp.sqrt(d_in)
        w = jax.random.uniform(kw, (d_in, d_out), jnp.float32, -bound, bound)
        b = jax.random.uniform(kb, (d_out,), jnp.float32, -bound, bound)
        params.append((w, b))
    return params


def reference_forward_f32(x, params):
    h = x
    for i, (w, b) in enumerate(params):
        h = h @ w + b
        if i < len(params) - 1:
            h = jnp.maximum(h, 0.0)
    return h


def reference_forward_bf16(x, params):
    """Matches the kernel's numerics: bf16 operands, f32 accumulation."""
    h = x.astype(jnp.bfloat16)
    for i, (w, b) in enumerate(params):
        h = jnp.dot(h, w.astype(jnp.bfloat16),
                    preferred_element_type=jnp.float32) + b
        if i < len(params) - 1:
            h = jnp.maximum(h, 0.0).astype(jnp.bfloat16)
    return h.astype(jnp.float32)


if __name__ == "__main__":
    key = jax.random.PRNGKey(0)
    k_params, k_x = jax.random.split(key)

    batch = 8
    input_size = 32
    num_classes = 10

    params = init_params(k_params, input_size, num_classes)
    packed = prepack_params(params)                    # one-time prep
    x = jax.random.normal(k_x, (batch, input_size), jnp.float32)

    out = ann_model_forward(x, packed)
    out = jax.block_until_ready(out)
    assert out.shape == (batch, num_classes)

    # Exactness vs a precision-matched (bf16 operands, f32 accum) reference.
    # TODO(synk): kernel uses bf16 operands with f32 accumulation; the original
    # PyTorch module is pure f32 — keep f32 weights if bit-level parity matters.
    ref_bf16 = reference_forward_bf16(x, params)
    assert jnp.allclose(out, ref_bf16, atol=1e-2, rtol=1e-2), \
        "mismatch vs bf16-matched reference"

    # Sanity vs the full-f32 reference (loose tolerance for bf16 operands).
    ref_f32 = reference_forward_f32(x, params)
    assert jnp.allclose(out, ref_f32, atol=5e-2, rtol=5e-2), \
        "mismatch vs f32 reference"

    print("KERNEL_OK")
</pallas_src>

<mosaic_0001>
module attributes {stable_mosaic.version = 11 : i64} {
  func.func @_mlp_kernel(%arg0: i32, %arg1: memref<128x128xf32, #tpu.memory_space<vmem>>, %arg2: memref<128x256xbf16, #tpu.memory_space<vmem>>, %arg3: memref<1x256xf32, #tpu.memory_space<vmem>>, %arg4: memref<256x512xbf16, #tpu.memory_space<vmem>>, %arg5: memref<1x512xf32, #tpu.memory_space<vmem>>, %arg6: memref<512x256xbf16, #tpu.memory_space<vmem>>, %arg7: memref<1x256xf32, #tpu.memory_space<vmem>>, %arg8: memref<256x128xbf16, #tpu.memory_space<vmem>>, %arg9: memref<1x128xf32, #tpu.memory_space<vmem>>, %arg10: memref<128x128xf32, #tpu.memory_space<vmem>>) attributes {dimension_semantics = [#tpu.dimension_semantics<parallel>], iteration_bounds = array<i64: 1>, scalar_prefetch = 0 : i64, scratch_operands = 0 : i64, tpu.core_type = #tpu.core_type<tc>, window_params = [{transform_indices = @transform_0, window_bounds = array<i64: 128, 128>}, {pipeline_mode = #tpu.pipeline_mode<synchronous>, transform_indices = @transform_1, window_bounds = array<i64: 128, 256>}, {pipeline_mode = #tpu.pipeline_mode<synchronous>, transform_indices = @transform_2, window_bounds = array<i64: 1, 256>}, {pipeline_mode = #tpu.pipeline_mode<synchronous>, transform_indices = @transform_3, window_bounds = array<i64: 256, 512>}, {pipeline_mode = #tpu.pipeline_mode<synchronous>, transform_indices = @transform_4, window_bounds = array<i64: 1, 512>}, {pipeline_mode = #tpu.pipeline_mode<synchronous>, transform_indices = @transform_5, window_bounds = array<i64: 512, 256>}, {pipeline_mode = #tpu.pipeline_mode<synchronous>, transform_indices = @transform_6, window_bounds = array<i64: 1, 256>}, {pipeline_mode = #tpu.pipeline_mode<synchronous>, transform_indices = @transform_7, window_bounds = array<i64: 256, 128>}, {pipeline_mode = #tpu.pipeline_mode<synchronous>, transform_indices = @transform_8, window_bounds = array<i64: 1, 128>}, {transform_indices = @transform_9, window_bounds = array<i64: 128, 128>}]} {
    %c0 = arith.constant 0 : index
    %c0_0 = arith.constant 0 : index
    %0 = vector.load %arg1[%c0, %c0_0] : memref<128x128xf32, #tpu.memory_space<vmem>>, vector<128x128xf32>
    %1 = arith.truncf %0 : vector<128x128xf32> to vector<128x128xbf16>
    %c0_1 = arith.constant 0 : index
    %c0_2 = arith.constant 0 : index
    %2 = vector.load %arg2[%c0_1, %c0_2] : memref<128x256xbf16, #tpu.memory_space<vmem>>, vector<128x256xbf16>
    %cst = arith.constant dense<0.000000e+00> : vector<128x256xf32>
    %3 = tpu.matmul %1, %2, %cst {dimension_numbers = #tpu.dot_dimension_numbers<[1], [0], [0], [1], [0, 0, 1, 1], [], []>} : vector<128x128xbf16>, vector<128x256xbf16>, vector<128x256xf32> -> vector<128x256xf32>
    %c0_3 = arith.constant 0 : index
    %c0_4 = arith.constant 0 : index
    %4 = vector.load %arg3[%c0_3, %c0_4] : memref<1x256xf32, #tpu.memory_space<vmem>>, vector<1x256xf32>
    %5 = vector.broadcast %4 : vector<1x256xf32> to vector<128x256xf32>
    %6 = arith.addf %3, %5 : vector<128x256xf32>
    %cst_5 = arith.constant 0.000000e+00 : f32
    %7 = vector.broadcast %cst_5 : f32 to vector<128x256xf32>
    %8 = arith.maximumf %6, %7 : vector<128x256xf32>
    %9 = arith.truncf %8 : vector<128x256xf32> to vector<128x256xbf16>
    %c0_6 = arith.constant 0 : index
    %c0_7 = arith.constant 0 : index
    %10 = vector.load %arg4[%c0_6, %c0_7] : memref<256x512xbf16, #tpu.memory_space<vmem>>, vector<256x512xbf16>
    %cst_8 = arith.constant dense<0.000000e+00> : vector<128x512xf32>
    %11 = tpu.matmul %9, %10, %cst_8 {dimension_numbers = #tpu.dot_dimension_numbers<[1], [0], [0], [1], [0, 0, 1, 1], [], []>} : vector<128x256xbf16>, vector<256x512xbf16>, vector<128x512xf32> -> vector<128x512xf32>
    %c0_9 = arith.constant 0 : index
    %c0_10 = arith.constant 0 : index
    %12 = vector.load %arg5[%c0_9, %c0_10] : memref<1x512xf32, #tpu.memory_space<vmem>>, vector<1x512xf32>
    %13 = vector.broadcast %12 : vector<1x512xf32> to vector<128x512xf32>
    %14 = arith.addf %11, %13 : vector<128x512xf32>
    %cst_11 = arith.constant 0.000000e+00 : f32
    %15 = vector.broadcast %cst_11 : f32 to vector<128x512xf32>
    %16 = arith.maximumf %14, %15 : vector<128x512xf32>
    %17 = arith.truncf %16 : vector<128x512xf32> to vector<128x512xbf16>
    %c0_12 = arith.constant 0 : index
    %c0_13 = arith.constant 0 : index
    %18 = vector.load %arg6[%c0_12, %c0_13] : memref<512x256xbf16, #tpu.memory_space<vmem>>, vector<512x256xbf16>
    %cst_14 = arith.constant dense<0.000000e+00> : vector<128x256xf32>
    %19 = tpu.matmul %17, %18, %cst_14 {dimension_numbers = #tpu.dot_dimension_numbers<[1], [0], [0], [1], [0, 0, 1, 1], [], []>} : vector<128x512xbf16>, vector<512x256xbf16>, vector<128x256xf32> -> vector<128x256xf32>
    %c0_15 = arith.constant 0 : index
    %c0_16 = arith.constant 0 : index
    %20 = vector.load %arg7[%c0_15, %c0_16] : memref<1x256xf32, #tpu.memory_space<vmem>>, vector<1x256xf32>
    %21 = vector.broadcast %20 : vector<1x256xf32> to vector<128x256xf32>
    %22 = arith.addf %19, %21 : vector<128x256xf32>
    %cst_17 = arith.constant 0.000000e+00 : f32
    %23 = vector.broadcast %cst_17 : f32 to vector<128x256xf32>
    %24 = arith.maximumf %22, %23 : vector<128x256xf32>
    %25 = arith.truncf %24 : vector<128x256xf32> to vector<128x256xbf16>
    %c0_18 = arith.constant 0 : index
    %c0_19 = arith.constant 0 : index
    %26 = vector.load %arg8[%c0_18, %c0_19] : memref<256x128xbf16, #tpu.memory_space<vmem>>, vector<256x128xbf16>
    %cst_20 = arith.constant dense<0.000000e+00> : vector<128x128xf32>
    %27 = tpu.matmul %25, %26, %cst_20 {dimension_numbers = #tpu.dot_dimension_numbers<[1], [0], [0], [1], [0, 0, 1, 1], [], []>} : vector<128x256xbf16>, vector<256x128xbf16>, vector<128x128xf32> -> vector<128x128xf32>
    %c0_21 = arith.constant 0 : index
    %c0_22 = arith.constant 0 : index
    %28 = vector.load %arg9[%c0_21, %c0_22] : memref<1x128xf32, #tpu.memory_space<vmem>>, vector<1x128xf32>
    %29 = vector.broadcast %28 : vector<1x128xf32> to vector<128x128xf32>
    %30 = arith.addf %27, %29 : vector<128x128xf32>
    %c0_23 = arith.constant 0 : index
    %c0_24 = arith.constant 0 : index
    %31 = vector.load %arg10[%c0_23, %c0_24] : memref<128x128xf32, #tpu.memory_space<vmem>>, vector<128x128xf32>
    tpu.vector_store %arg10[%c0_23, %c0_24], %30 {strides = array<i32>} : memref<128x128xf32, #tpu.memory_space<vmem>>, vector<128x128xf32>,
    return
  }
  func.func @transform_0(%arg0: i32) -> (i32, i32) {
    %c0_i32 = arith.constant 0 : i32
    %c0_i32_0 = arith.constant 0 : i32
    return %arg0, %c0_i32 : i32, i32
  }
  func.func @transform_1(%arg0: i32) -> (i32, i32) {
    %c0_i32 = arith.constant 0 : i32
    %c0_i32_0 = arith.constant 0 : i32
    %c0_i32_1 = arith.constant 0 : i32
    return %c0_i32, %c0_i32_0 : i32, i32
  }
  func.func @transform_2(%arg0: i32) -> (i32, i32) {
    %c0_i32 = arith.constant 0 : i32
    %c0_i32_0 = arith.constant 0 : i32
    %c0_i32_1 = arith.constant 0 : i32
    return %c0_i32, %c0_i32_0 : i32, i32
  }
  func.func @transform_3(%arg0: i32) -> (i32, i32) {
    %c0_i32 = arith.constant 0 : i32
    %c0_i32_0 = arith.constant 0 : i32
    %c0_i32_1 = arith.constant 0 : i32
    return %c0_i32, %c0_i32_0 : i32, i32
  }
  func.func @transform_4(%arg0: i32) -> (i32, i32) {
    %c0_i32 = arith.constant 0 : i32
    %c0_i32_0 = arith.constant 0 : i32
    %c0_i32_1 = arith.constant 0 : i32
    return %c0_i32, %c0_i32_0 : i32, i32
  }
  func.func @transform_5(%arg0: i32) -> (i32, i32) {
    %c0_i32 = arith.constant 0 : i32
    %c0_i32_0 = arith.constant 0 : i32
    %c0_i32_1 = arith.constant 0 : i32
    return %c0_i32, %c0_i32_0 : i32, i32
  }
  func.func @transform_6(%arg0: i32) -> (i32, i32) {
    %c0_i32 = arith.constant 0 : i32
    %c0_i32_0 = arith.constant 0 : i32
    %c0_i32_1 = arith.constant 0 : i32
    return %c0_i32, %c0_i32_0 : i32, i32
  }
  func.func @transform_7(%arg0: i32) -> (i32, i32) {
    %c0_i32 = arith.constant 0 : i32
    %c0_i32_0 = arith.constant 0 : i32
    %c0_i32_1 = arith.constant 0 : i32
    return %c0_i32, %c0_i32_0 : i32, i32
  }
  func.func @transform_8(%arg0: i32) -> (i32, i32) {
    %c0_i32 = arith.constant 0 : i32
    %c0_i32_0 = arith.constant 0 : i32
    %c0_i32_1 = arith.constant 0 : i32
    return %c0_i32, %c0_i32_0 : i32, i32
  }
  func.func @transform_9(%arg0: i32) -> (i32, i32) {
    %c0_i32 = arith.constant 0 : i32
    %c0_i32_0 = arith.constant 0 : i32
    return %arg0, %c0_i32 : i32, i32
  }
}

</mosaic_0001>

<bundles_post_ra>
// kernel: tpu_custom_call.1
= control target key start
LH: loop header
LB: loop body
LE: loop exit
PB: predicated region body
PF: predicated region fallthrough
CT: control target
= control target key end

     0   :  { %14 = vsyncpa [#allocation3], 0  ;;  %s3132_s0 = inlined_call_operand.hbm [shape: f32[128,128], index: 0, kind: input, shape index: {}]   ;;  %s3133_s1 = inlined_call_operand.hbm [shape: bf16[128,256], index: 1, kind: input, shape index: {}]   ;;  %s3134_s2 = inlined_call_operand.vmem [shape: f32[1,256], index: 2, kind: input, shape index: {}]   ;;  %s3135_s3 = inlined_call_operand.hbm [shape: bf16[256,512], index: 3, kind: input, shape index: {}]   ;;  %s3136_s4 = inlined_call_operand.vmem [shape: f32[1,512], index: 4, kind: input, shape index: {}]   ;;  %s3137_s5 = inlined_call_operand.hbm [shape: bf16[512,256], index: 5, kind: input, shape index: {}]   ;;  %s3138_s6 = inlined_call_operand.vmem [shape: f32[1,256], index: 6, kind: input, shape index: {}]   ;;  %s3139_s7 = inlined_call_operand.hbm [shape: bf16[256,128], index: 7, kind: input, shape index: {}]   ;;  %s3140_s8 = inlined_call_operand.vmem [shape: f32[1,128], index: 8, kind: input, shape index: {}]   ;;  %s3141_s9 = inlined_call_operand.hbm [shape: f32[128,128], index: 9, kind: output, shape index: {}]  }
   0x1   :  { %15 = vsyncpa [#allocation6], 0 }
   0x2   :  { %16 = vsyncpa [#allocation9], 0 }
   0x3   :  { %17 = vsyncpa [#allocation4], 0  ;;  %s2734_s30 = smov [#allocation5]   ;;  %s2735_s11 = smov [#allocation8]  }
   0x4   :  { %s35_s10 = sshll.u32 %s2734_s30, 4  ;;  %s63_s12 = sshll.u32 %s2735_s11, 4  ;;  %s36_s10 = int_to_ptr.vmem [resolvable:$true] %s35_s10  ;;  %s2797_s12 = int_to_ptr.vmem [resolvable:$true] %s63_s12 }
   0x5   :  { %s2594_s15 = scalar_lea.hbm %s3133_s1, 2048 }
   0x6   :  { %p2595_p0 = scmp.ne.s32.totalorder %s3133_s1, %s2594_s15  ;;  %p2598_p1 = scmp.lt.u32.totalorder %s2594_s15, %s3133_s1 }
   0x8   :  { %p2600_p2 = pnand %p2598_p1, %p2595_p0 }
   0xa   :  { %2603 = shalt.err (!%p2600_p2)
}
   0xb   :  { %s2604_s20 = scalar_lea.vmem %s36_s10, 2048  ;;  %p2609_p4 = scmp.lt.s32.totalorder %s36_s10, %s36_s10 }
   0xc   :  { %p2605_p3 = scmp.ne.s32.totalorder %s36_s10, %s2604_s20  ;;  %p2610_p5 = scmp.lt.s32.totalorder %s2604_s20, %s2604_s20 }
   0xe   :  { %p2611_p6 = por %p2610_p5, %p2609_p4 }
  0x10   :  { %p2612_p7 = pnand %p2611_p6, %p2605_p3 }
  0x12   :  { %2615 = shalt.err (!%p2612_p7)
}
  0x13   :  { %s2736_s21 = smov 128   ;;  %s2737_s22 = smov 8  }
  0x14   :  { %41 = dma.hbm_to_vmem [thread:$0]  %s3133_s1, 2048, %s36_s10, [#allocation6], %s2736_s21, %s2736_s21, %s2737_s22  }
  0x15   :  { %s2616_s27 = scalar_lea.hbm %s3137_s5, 8192 }
  0x16   :  { %p2617_p8 = scmp.ne.s32.totalorder %s3137_s5, %s2616_s27  ;;  %p2620_p9 = scmp.lt.u32.totalorder %s2616_s27, %s3137_s5 }
  0x18   :  { %p2622_p10 = pnand %p2620_p9, %p2617_p8 }
  0x1a   :  { %2625 = shalt.err (!%p2622_p10)
}
  0x1b   :  { %s2626_s13 = scalar_lea.vmem %s2797_s12, 8192  ;;  %p2631_p12 = scmp.lt.s32.totalorder %s2797_s12, %s2797_s12 }
  0x1c   :  { %p2627_p11 = scmp.ne.s32.totalorder %s2797_s12, %s2626_s13  ;;  %p2632_p13 = scmp.lt.s32.totalorder %s2626_s13, %s2626_s13 }
  0x1e   :  { %p2633_p0 = por %p2632_p13, %p2631_p12 }
  0x20   :  { %p2634_p1 = pnand %p2633_p0, %p2627_p11 }
  0x22   :  { %2637 = shalt.err (!%p2634_p1)
}
  0x23   :  { %69 = dma.hbm_to_vmem [thread:$0]  %s3137_s5, 8192, %s2797_s12, [#allocation9], %s2736_s21, %s2736_s21, %s2737_s22  }
  0x24   :  { %s2738_s14 = smov [#allocation2]   ;;  %s2739_s16 = smov [#allocation7]  }
  0x25   :  { %s23_s15 = sshll.u32 %s2738_s14, 4  ;;  %s49_s17 = sshll.u32 %s2739_s16, 4  ;;  %s24_s15 = int_to_ptr.vmem [resolvable:$true] %s23_s15  ;;  %s2834_s17 = int_to_ptr.vmem [resolvable:$true] %s49_s17 }
  0x26   :  { %s2638_s20 = scalar_lea.hbm %s3132_s0, 2048 }
  0x27   :  { %p2639_p2 = scmp.ne.s32.totalorder %s3132_s0, %s2638_s20  ;;  %p2642_p3 = scmp.lt.u32.totalorder %s2638_s20, %s3132_s0 }
  0x29   :  { %p2644_p4 = pnand %p2642_p3, %p2639_p2 }
  0x2b   :  { %2647 = shalt.err (!%p2644_p4)
}
  0x2c   :  { %s2648_s5 = scalar_lea.vmem %s24_s15, 2048  ;;  %p2653_p6 = scmp.lt.s32.totalorder %s24_s15, %s24_s15 }
  0x2d   :  { %p2649_p5 = scmp.ne.s32.totalorder %s24_s15, %s2648_s5  ;;  %p2654_p7 = scmp.lt.s32.totalorder %s2648_s5, %s2648_s5 }
  0x2f   :  { %p2655_p8 = por %p2654_p7, %p2653_p6 }
  0x31   :  { %p2656_p9 = pnand %p2655_p8, %p2649_p5 }
  0x33   :  { %2659 = shalt.err (!%p2656_p9)
}
  0x34   :  { %29 = dma.hbm_to_vmem [thread:$0]  %s3132_s0, 2048, %s24_s15, [#allocation3], %s2736_s21, %s2736_s21, %s2737_s22  }
  0x35   :  { %s2660_s30 = scalar_lea.hbm %s3135_s3, 8192 }
  0x36   :  { %p2661_p10 = scmp.ne.s32.totalorder %s3135_s3, %s2660_s30  ;;  %p2664_p11 = scmp.lt.u32.totalorder %s2660_s30, %s3135_s3 }
  0x38   :  { %p2666_p12 = pnand %p2664_p11, %p2661_p10 }
  0x3a   :  { %2669 = shalt.err (!%p2666_p12)
}
  0x3b   :  { %s2670_s14 = scalar_lea.vmem %s2834_s17, 8192  ;;  %p2675_p0 = scmp.lt.s32.totalorder %s2834_s17, %s2834_s17 }
  0x3c   :  { %p2671_p13 = scmp.ne.s32.totalorder %s2834_s17, %s2670_s14  ;;  %p2676_p1 = scmp.lt.s32.totalorder %s2670_s14, %s2670_s14 }
  0x3e   :  { %p2677_p2 = por %p2676_p1, %p2675_p0 }
  0x40   :  { %p2678_p3 = pnand %p2677_p2, %p2671_p13 }
  0x42   :  { %2681 = shalt.err (!%p2678_p3)
}
  0x43   :  { %s2740_s0 = smov 256   ;;  %s2741_s15 = smov 16  }
  0x44   :  { %55 = dma.hbm_to_vmem [thread:$0]  %s3135_s3, 8192, %s2834_s17, [#allocation6], %s2740_s0, %s2740_s0, %s2741_s15  }
  0x45   :  { %s2742_s19 = smov [#allocation10]   ;;  %s2682_s25 = scalar_lea.hbm %s3139_s7, 2048 }
  0x46   :  { %s77_s20 = sshll.u32 %s2742_s19, 4  ;;  %p2683_p4 = scmp.ne.s32.totalorder %s3139_s7, %s2682_s25  ;;  %s78_s20 = int_to_ptr.vmem [resolvable:$true] %s77_s20 }
  0x47   :  { %p2686_p5 = scmp.lt.u32.totalorder %s2682_s25, %s3139_s7 }
  0x49   :  { %p2688_p6 = pnand %p2686_p5, %p2683_p4 }
  0x4b   :  { %2691 = shalt.err (!%p2688_p6)
}
  0x4c   :  { %s2692_s28 = scalar_lea.vmem %s78_s20, 2048  ;;  %p2697_p8 = scmp.lt.s32.totalorder %s78_s20, %s78_s20 }
  0x4d   :  { %p2693_p7 = scmp.ne.s32.totalorder %s78_s20, %s2692_s28  ;;  %p2698_p9 = scmp.lt.s32.totalorder %s2692_s28, %s2692_s28 }
  0x4f   :  { %p2699_p10 = por %p2698_p9, %p2697_p8 }
  0x51   :  { %p2700_p11 = pnand %p2699_p10, %p2693_p7 }
  0x53   :  { %2703 = shalt.err (!%p2700_p11)
}
  0x54   :  { %s2743_s3 = smov 64   ;;  %s2744_s17 = smov 4  }
  0x55   :  { %83 = dma.hbm_to_vmem [thread:$0]  %s3139_s7, 2048, %s78_s20, [#allocation9], %s2743_s3, %s2743_s3, %s2744_s17  }
  0x56   :  { %2726 = dma.done.wait [#allocation3], 2048  }
  0x57   :  { %2727 = vsyncadd [#allocation3], 4294965248 }
  0x58   :  { %2728 = dma.done.wait [#allocation6], 10240  }
  0x59   :  { %2729 = vsyncadd [#allocation6], 4294957056 }
  0x5a   :  { %2730 = dma.done.wait [#allocation9], 10240  }
  0x5b   :  { %2731 = vsyncadd [#allocation9], 4294957056  ;;  %v2745_v0 = vmov 0   ;;  %v2362_v1 = vld [vmem:[#allocation5 + $0x4] ss:$8 sps:$4 sm:$0xff]   ;;  %v104_v34 = vld [vmem:[#allocation2 + $0x10] sm:$0xff] }
  0x5c   :  { %266 = vmatprep.mubr.bf16.mxu0 %v2745_v0  ;;  %v2364_v2 = vld [vmem:[#allocation5] ss:$8 sps:$4 sm:$0xff]   ;;  %234 = vmatprep.subr.bf16.mxu0 %v2362_v1  ;;  %v2365_v3 = vld [vmem:[#allocation5 + $0x14] ss:$8 sps:$4 sm:$0xff]   ;;  %v2367_v4 = vld [vmem:[#allocation5 + $0x10] ss:$8 sps:$4 sm:$0xff]  }
  0x5d   :  { %235 = vmatpush1.bf16.msra.mxu0 %v2364_v2  ;;  %v2368_v5 = vld [vmem:[#allocation5 + $0x24] ss:$8 sps:$4 sm:$0xff]   ;;  %v2370_v6 = vld [vmem:[#allocation5 + $0x20] ss:$8 sps:$4 sm:$0xff]   ;;  %v2371_v7 = vld [vmem:[#allocation5 + $0x34] ss:$8 sps:$4 sm:$0xff]  }
  0x5e   :  { %236 = vmatprep.subr.bf16.mxu0 %v2365_v3  ;;  %v2373_v8 = vld [vmem:[#allocation5 + $0x30] ss:$8 sps:$4 sm:$0xff]   ;;  %v2374_v9 = vld [vmem:[#allocation5 + $0x44] ss:$8 sps:$4 sm:$0xff]   ;;  %v2376_v10 = vld [vmem:[#allocation5 + $0x40] ss:$8 sps:$4 sm:$0xff]  }
  0x5f   :  { %v2377_v11 = vld [vmem:[#allocation5 + $0x54] ss:$8 sps:$4 sm:$0xff]   ;;  %v2379_v13 = vld [vmem:[#allocation5 + $0x50] ss:$8 sps:$4 sm:$0xff]   ;;  %v2380_v16 = vld [vmem:[#allocation5 + $0x64] ss:$8 sps:$4 sm:$0xff]  }
  0x60   :  { %v2386_v12 = vld [vmem:[#allocation7 + $0x4] ss:$16 sps:$4 sm:$0xff]   ;;  %v2391_v14 = vld [vmem:[#allocation7] ss:$16 sps:$4 sm:$0xff]   ;;  %v103_v25 = vld [vmem:[#allocation2 + $0x8] sm:$0xff] }
  0x61   :  { %237 = vmatpush1.bf16.msra.mxu0 %v2367_v4  ;;  %801 = vmatprep.subr.bf16.mxu1 %v2386_v12  ;;  %v2392_v15 = vld [vmem:[#allocation7 + $0x24] ss:$16 sps:$4 sm:$0xff]   ;;  %v2397_v17 = vld [vmem:[#allocation7 + $0x20] ss:$16 sps:$4 sm:$0xff]   ;;  %v2390_v26 = vld [vmem:[#allocation7 + $0xc] ss:$16 sps:$4 sm:$0xff]  }
  0x62   :  { %238 = vmatprep.subr.bf16.mxu0 %v2368_v5  ;;  %802 = vmatpush1.bf16.msra.mxu1 %v2391_v14  ;;  %v2398_v18 = vld [vmem:[#allocation7 + $0x44] ss:$16 sps:$4 sm:$0xff]   ;;  %v2382_v19 = vld [vmem:[#allocation5 + $0x60] ss:$8 sps:$4 sm:$0xff]   ;;  %v2385_v23 = vld [vmem:[#allocation5 + $0x70] ss:$8 sps:$4 sm:$0xff]  }
  0x63   :  { %803 = vmatprep.subr.bf16.mxu1 %v2392_v15  ;;  %v2383_v20 = vld [vmem:[#allocation5 + $0x74] ss:$8 sps:$4 sm:$0xff]   ;;  %v2403_v21 = vld [vmem:[#allocation7 + $0x40] ss:$16 sps:$4 sm:$0xff]   ;;  %v2388_v30 = vld [vmem:[#allocation7 + $0x8] ss:$16 sps:$4 sm:$0xff]  }
  0x64   :  { %v2404_v22 = vld [vmem:[#allocation7 + $0x64] ss:$16 sps:$4 sm:$0xff]   ;;  %v2409_v27 = vld [vmem:[#allocation7 + $0x60] ss:$16 sps:$4 sm:$0xff]   ;;  %v2396_v31 = vld [vmem:[#allocation7 + $0x2c] ss:$16 sps:$4 sm:$0xff]  }
  0x65   :  { %239 = vmatpush1.bf16.msra.mxu0 %v2370_v6  ;;  %v102_v24 = vld [vmem:[#allocation2] sm:$0xff]  ;;  %v105_v35 = vld [vmem:[#allocation2 + $0x18] sm:$0xff]  ;;  %v107_v46 = vld [vmem:[#allocation2 + $0x28] sm:$0xff] }
  0x66   :  { %240 = vmatprep.subr.bf16.mxu0 %v2371_v7  ;;  %804 = vmatpush1.bf16.msra.mxu1 %v2397_v17  ;;  %v2410_v28 = vld [vmem:[#allocation7 + $0x84] ss:$16 sps:$4 sm:$0xff]   ;;  %v118_v29 = vpack.c.bf16 %v103_v25, %v102_v24  ;;  %v2415_v32 = vld [vmem:[#allocation7 + $0x80] ss:$16 sps:$4 sm:$0xff]   ;;  %v2394_v36 = vld [vmem:[#allocation7 + $0x28] ss:$16 sps:$4 sm:$0xff]   ;;  %v119_v40 = vpack.c.bf16 %v105_v35, %v104_v34 }
  0x67   :  { %805 = vmatprep.subr.bf16.mxu1 %v2398_v18  ;;  %v2416_v33 = vld [vmem:[#allocation7 + $0xa4] ss:$16 sps:$4 sm:$0xff]   ;;  %v2402_v37 = vld [vmem:[#allocation7 + $0x4c] ss:$16 sps:$4 sm:$0xff]   ;;  %v2421_v38 = vld [vmem:[#allocation7 + $0xa0] ss:$16 sps:$4 sm:$0xff]  }
  0x68   :  { %v2422_v39 = vld [vmem:[#allocation7 + $0xc4] ss:$16 sps:$4 sm:$0xff]   ;;  %v2400_v41 = vld [vmem:[#allocation7 + $0x48] ss:$16 sps:$4 sm:$0xff]   ;;  %v2408_v42 = vld [vmem:[#allocation7 + $0x6c] ss:$16 sps:$4 sm:$0xff]  }
  0x69   :  { %241 = vmatpush1.bf16.msra.mxu0 %v2373_v8  ;;  %v2427_v43 = vld [vmem:[#allocation7 + $0xc0] ss:$16 sps:$4 sm:$0xff]   ;;  %v2428_v44 = vld [vmem:[#allocation7 + $0xe4] ss:$16 sps:$4 sm:$0xff]   ;;  %v2406_v47 = vld [vmem:[#allocation7 + $0x68] ss:$16 sps:$4 sm:$0xff]  }
  0x6a   :  { %242 = vmatprep.subr.bf16.mxu0 %v2374_v9  ;;  %806 = vmatpush1.bf16.msra.mxu1 %v2403_v21  ;;  %v106_v45 = vld [vmem:[#allocation2 + $0x20] sm:$0xff]  ;;  %v2414_v48 = vld [vmem:[#allocation7 + $0x8c] ss:$16 sps:$4 sm:$0xff]   ;;  %v2412_v52 = vld [vmem:[#allocation7 + $0x88] ss:$16 sps:$4 sm:$0xff]  }
  0x6b   :  { %807 = vmatprep.subr.bf16.mxu1 %v2404_v22  ;;  %v2433_v49 = vld [vmem:[#allocation7 + $0xe0] ss:$16 sps:$4 sm:$0xff]   ;;  %v2434_v50 = vld [vmem:[#allocation7 + $0x104] ss:$16 sps:$4 sm:$0xff]   ;;  %v120_v51 = vpack.c.bf16 %v107_v46, %v106_v45  ;;  %v2420_v53 = vld [vmem:[#allocation7 + $0xac] ss:$16 sps:$4 sm:$0xff]  }
  0x6c   :  { %v2439_v54 = vld [vmem:[#allocation7 + $0x100] ss:$16 sps:$4 sm:$0xff]   ;;  %v2440_v55 = vld [vmem:[#allocation7 + $0x124] ss:$16 sps:$4 sm:$0xff]   ;;  %v109_v57 = vld [vmem:[#allocation2 + $0x38] sm:$0xff] }
  0x6d   :  { %243 = vmatpush1.bf16.msra.mxu0 %v2376_v10  ;;  %v108_v56 = vld [vmem:[#allocation2 + $0x30] sm:$0xff]  ;;  %v2418_v58 = vld [vmem:[#allocation7 + $0xa8] ss:$16 sps:$4 sm:$0xff]   ;;  %v2426_v59 = vld [vmem:[#allocation7 + $0xcc] ss:$16 sps:$4 sm:$0xff]  }
  0x6e   :  { %244 = vmatprep.subr.bf16.mxu0 %v2377_v11  ;;  %808 = vmatpush1.bf16.msra.mxu1 %v2409_v27  ;;  %v2445_v60 = vld [vmem:[#allocation7 + $0x120] ss:$16 sps:$4 sm:$0xff]   ;;  %v2424_v61 = vld [vmem:[#allocation7 + $0xc8] ss:$16 sps:$4 sm:$0xff]   ;;  %v2446_v62 = vld [vmem:[#allocation7 + $0x144] ss:$16 sps:$4 sm:$0xff]   ;;  %v121_v63 = vpack.c.bf16 %v109_v57, %v108_v56 }
  0x6f   :  { %809 = vmatprep.subr.bf16.mxu1 %v2410_v28  ;;  %v2432_v1 = vld [vmem:[#allocation7 + $0xec] ss:$16 sps:$4 sm:$0xff]   ;;  %v2451_v2 = vld [vmem:[#allocation7 + $0x140] ss:$16 sps:$4 sm:$0xff]   ;;  %v2452_v3 = vld [vmem:[#allocation7 + $0x164] ss:$16 sps:$4 sm:$0xff]  }
  0x70   :  { %v110_v4 = vld [vmem:[#allocation2 + $0x40] sm:$0xff]  ;;  %v111_v5 = vld [vmem:[#allocation2 + $0x48] sm:$0xff]  ;;  %v112_v15 = vld [vmem:[#allocation2 + $0x50] sm:$0xff] }
  0x71   :  { %245 = vmatpush1.bf16.msra.mxu0 %v2379_v13  ;;  %v2430_v6 = vld [vmem:[#allocation7 + $0xe8] ss:$16 sps:$4 sm:$0xff]   ;;  %v2438_v7 = vld [vmem:[#allocation7 + $0x10c] ss:$16 sps:$4 sm:$0xff]   ;;  %v2457_v8 = vld [vmem:[#allocation7 + $0x160] ss:$16 sps:$4 sm:$0xff]   ;;  %v122_v11 = vpack.c.bf16 %v111_v5, %v110_v4 }
  0x72   :  { %246 = vmatprep.subr.bf16.mxu0 %v2380_v16  ;;  %810 = vmatpush1.bf16.msra.mxu1 %v2415_v32  ;;  %v2458_v9 = vld [vmem:[#allocation7 + $0x184] ss:$16 sps:$4 sm:$0xff]   ;;  %v2436_v10 = vld [vmem:[#allocation7 + $0x108] ss:$16 sps:$4 sm:$0xff]   ;;  %v2444_v12 = vld [vmem:[#allocation7 + $0x12c] ss:$16 sps:$4 sm:$0xff]  }
  0x73   :  { %811 = vmatprep.subr.bf16.mxu1 %v2416_v33  ;;  %v2463_v13 = vld [vmem:[#allocation7 + $0x180] ss:$16 sps:$4 sm:$0xff]   ;;  %v2464_v14 = vld [vmem:[#allocation7 + $0x1a4] ss:$16 sps:$4 sm:$0xff]   ;;  %v113_v16 = vld [vmem:[#allocation2 + $0x58] sm:$0xff] }
  0x74   :  { %v2442_v17 = vld [vmem:[#allocation7 + $0x128] ss:$16 sps:$4 sm:$0xff]   ;;  %v2450_v18 = vld [vmem:[#allocation7 + $0x14c] ss:$16 sps:$4 sm:$0xff]   ;;  %v114_v22 = vld [vmem:[#allocation2 + $0x60] sm:$0xff] }
  0x75   :  { %247 = vmatpush1.bf16.msra.mxu0 %v2382_v19  ;;  %v2448_v19 = vld [vmem:[#allocation7 + $0x148] ss:$16 sps:$4 sm:$0xff]   ;;  %v2456_v21 = vld [vmem:[#allocation7 + $0x16c] ss:$16 sps:$4 sm:$0xff]   ;;  %v2469_v33 = vld [vmem:[#allocation7 + $0x1a0] ss:$16 sps:$4 sm:$0xff]  }
  0x76   :  { %248 = vmatprep.subr.bf16.mxu0 %v2383_v20  ;;  %812 = vmatpush1.bf16.msra.mxu1 %v2421_v38  ;;  %v123_v20 = vpack.c.bf16 %v113_v16, %v112_v15  ;;  %v2454_v24 = vld [vmem:[#allocation7 + $0x168] ss:$16 sps:$4 sm:$0xff]   ;;  %v2462_v25 = vld [vmem:[#allocation7 + $0x18c] ss:$16 sps:$4 sm:$0xff]   ;;  %v2470_v34 = vld [vmem:[#allocation7 + $0x1c4] ss:$16 sps:$4 sm:$0xff]  }
  0x77   :  { %813 = vmatprep.subr.bf16.mxu1 %v2422_v39  ;;  %v2468_v28 = vld [vmem:[#allocation7 + $0x1ac] ss:$16 sps:$4 sm:$0xff]   ;;  %v2476_v38 = vld [vmem:[#allocation7 + $0x1e4] ss:$16 sps:$4 sm:$0xff]   ;;  %v142_v45 = vld [vmem:[%s3134_s2] sm:$0x3] }
  0x78   :  { %v2474_v35 = vld [vmem:[#allocation7 + $0x1cc] ss:$16 sps:$4 sm:$0xff]  }
  0x79   :  { %249 = vmatpush1.bf16.msra.mxu0 %v2385_v23  ;;  %v115_v23 = vld [vmem:[#allocation2 + $0x68] sm:$0xff]  ;;  %v2487_v4 = vld [vmem:[#allocation8 + $0x14] ss:$8 sps:$4 sm:$0xff]  }
  0x7a   :  { %914 = vmatprep.subr.bf16.mxu0 %v2390_v26  ;;  %814 = vmatpush1.bf16.msra.mxu1 %v2427_v43  ;;  %v2460_v26 = vld [vmem:[#allocation7 + $0x188] ss:$16 sps:$4 sm:$0xff]   ;;  %v124_v27 = vpack.c.bf16 %v115_v23, %v114_v22  ;;  %v2480_v39 = vld [vmem:[#allocation7 + $0x1ec] ss:$16 sps:$4 sm:$0xff]  }
  0x7b   :  { %815 = vmatprep.subr.bf16.mxu1 %v2428_v44  ;;  %v2493_v22 = vld [vmem:[#allocation8 + $0x34] ss:$8 sps:$4 sm:$0xff]  }
  0x7c   :  { %267 = vmatmul.mubr.bf16.vlgmr.msra.gmra.mrb[0].mxu0 %v118_v29  ;;  %v116_v29 = vld [vmem:[#allocation2 + $0x70] sm:$0xff] }
  0x7d   :  { %276 = vmatprep.mubr.bf16.mxu0 %v2745_v0  ;;  %915 = vmatpush1.bf16.msra.mxu0 %v2388_v30  ;;  %v117_v30 = vld [vmem:[#allocation2 + $0x78] sm:$0xff] }
  0x7e   :  { %916 = vmatprep.subr.bf16.mxu0 %v2396_v31  ;;  %816 = vmatpush1.bf16.msra.mxu1 %v2433_v49  ;;  %v2466_v31 = vld [vmem:[#allocation7 + $0x1a8] ss:$16 sps:$4 sm:$0xff]   ;;  %v125_v32 = vpack.c.bf16 %v117_v30, %v116_v29 }
  0x7f   :  { %817 = vmatprep.subr.bf16.mxu1 %v2434_v50 }
  0x81   :  { %917 = vmatpush1.bf16.msra.mxu0 %v2394_v36  ;;  %v2472_v36 = vld [vmem:[#allocation7 + $0x1c8] ss:$16 sps:$4 sm:$0xff]  }
  0x82   :  { %918 = vmatprep.subr.bf16.mxu0 %v2402_v37  ;;  %818 = vmatpush1.bf16.msra.mxu1 %v2439_v54  ;;  %v2475_v37 = vld [vmem:[#allocation7 + $0x1c0] ss:$16 sps:$4 sm:$0xff]  }
  0x83   :  { %819 = vmatprep.subr.bf16.mxu1 %v2440_v55 }
  0x84   :  { %277 = vmatmul.mubr.bf16.gmra.mrb[4].mxu0 %v119_v40  ;;  %v2478_v40 = vld [vmem:[#allocation7 + $0x1e8] ss:$16 sps:$4 sm:$0xff]  }
  0x85   :  { %286 = vmatprep.mubr.bf16.mxu0 %v2745_v0  ;;  %919 = vmatpush1.bf16.msra.mxu0 %v2400_v41  ;;  %v2481_v41 = vld [vmem:[#allocation7 + $0x1e0] ss:$16 sps:$4 sm:$0xff]  }
  0x86   :  { %920 = vmatprep.subr.bf16.mxu0 %v2408_v42  ;;  %820 = vmatpush1.bf16.msra.mxu1 %v2445_v60  ;;  %v144_v42 = vlaneseq }
  0x87   :  { %821 = vmatprep.subr.bf16.mxu1 %v2446_v62 }
  0x88   :  { %v2888_v43 = vshrl.u32 %v144_v42, 7 }
  0x89   :  { %921 = vmatpush1.bf16.msra.mxu0 %v2406_v47 }
  0x8a   :  { %922 = vmatprep.subr.bf16.mxu0 %v2414_v48  ;;  %822 = vmatpush1.bf16.msra.mxu1 %v2451_v2  ;;  %v2891_v44 = vsub.s32 0, %v2888_v43  ;;  %v2897_v46 = vsub.s32 1, %v2888_v43 }
  0x8b   :  { %823 = vmatprep.subr.bf16.mxu1 %v2452_v3 }
  0x8c   :  { %287 = vmatmul.mubr.bf16.gmra.mrb[8].mxu0 %v120_v51  ;;  %v2900_v47 = vrot.slane %v142_v45, %v2891_v44  ;;  %v2903_v48 = vrot.slane %v142_v45, %v2897_v46 }
  0x8d   :  { %296 = vmatprep.mubr.bf16.mxu0 %v2745_v0  ;;  %923 = vmatpush1.bf16.msra.mxu0 %v2412_v52 }
  0x8e   :  { %924 = vmatprep.subr.bf16.mxu0 %v2420_v53  ;;  %824 = vmatpush1.bf16.msra.mxu1 %v2457_v8 }
  0x8f   :  { %825 = vmatprep.subr.bf16.mxu1 %v2458_v9 }
  0x91   :  { %925 = vmatpush1.bf16.msra.mxu0 %v2418_v58 }
  0x92   :  { %926 = vmatprep.subr.bf16.mxu0 %v2426_v59  ;;  %826 = vmatpush1.bf16.msra.mxu1 %v2463_v13  ;;  %v2490_v13 = vld [vmem:[#allocation8 + $0x24] ss:$8 sps:$4 sm:$0xff]  }
  0x93   :  { %827 = vmatprep.subr.bf16.mxu1 %v2464_v14 }
  0x94   :  { %297 = vmatmul.mubr.bf16.gmra.mrb[12].mxu0 %v121_v63 }
  0x95   :  { %306 = vmatprep.mubr.bf16.mxu0 %v2745_v0  ;;  %927 = vmatpush1.bf16.msra.mxu0 %v2424_v61 }
  0x96   :  { %928 = vmatprep.subr.bf16.mxu0 %v2432_v1  ;;  %828 = vmatpush1.bf16.msra.mxu1 %v2469_v33  ;;  %v2482_v1 = vld [vmem:[#allocation8] ss:$8 sps:$4 sm:$0xff]  }
  0x97   :  { %829 = vmatprep.subr.bf16.mxu1 %v2470_v34 }
  0x99   :  { %929 = vmatpush1.bf16.msra.mxu0 %v2430_v6 }
  0x9a   :  { %930 = vmatprep.subr.bf16.mxu0 %v2438_v7  ;;  %830 = vmatpush1.bf16.msra.mxu1 %v2475_v37  ;;  %v2494_v37 = vld [vmem:[#allocation8 + $0x40] ss:$8 sps:$4 sm:$0xff]  }
  0x9b   :  { %831 = vmatprep.subr.bf16.mxu1 %v2476_v38 }
  0x9c   :  { %307 = vmatmul.mubr.bf16.gmra.mrb[16].mxu0 %v122_v11 }
  0x9d   :  { %316 = vmatprep.mubr.bf16.mxu0 %v2745_v0  ;;  %931 = vmatpush1.bf16.msra.mxu0 %v2436_v10  ;;  %v2485_v10 = vld [vmem:[#allocation8 + $0x10] ss:$8 sps:$4 sm:$0xff]  }
  0x9e   :  { %932 = vmatprep.subr.bf16.mxu0 %v2444_v12  ;;  %832 = vmatpush1.bf16.msra.mxu1 %v2481_v41 }
  0xa1   :  { %933 = vmatpush1.bf16.msra.mxu0 %v2442_v17 }
  0xa2   :  { %934 = vmatprep.subr.bf16.mxu0 %v2450_v18 }
  0xa4   :  { %317 = vmatmul.mubr.bf16.gmra.mrb[20].mxu0 %v123_v20 }
  0xa5   :  { %326 = vmatprep.mubr.bf16.mxu0 %v2745_v0  ;;  %935 = vmatpush1.bf16.msra.mxu0 %v2448_v19  ;;  %v2488_v19 = vld [vmem:[#allocation8 + $0x20] ss:$8 sps:$4 sm:$0xff]  }
  0xa6   :  { %936 = vmatprep.subr.bf16.mxu0 %v2456_v21 }
  0xa9   :  { %937 = vmatpush1.bf16.msra.mxu0 %v2454_v24 }
  0xaa   :  { %938 = vmatprep.subr.bf16.mxu0 %v2462_v25 }
  0xac   :  { %327 = vmatmul.mubr.bf16.gmra.mrb[24].mxu0 %v124_v27 }
  0xad   :  { %336 = vmatprep.mubr.bf16.mxu0 %v2745_v0  ;;  %939 = vmatpush1.bf16.msra.mxu0 %v2460_v26  ;;  %v2484_v0 = vld [vmem:[#allocation8 + $0x4] ss:$8 sps:$4 sm:$0xff]  }
  0xae   :  { %940 = vmatprep.subr.bf16.mxu0 %v2468_v28  ;;  %1519 = vmatprep.subr.bf16.mxu1 %v2484_v0  ;;  %v2491_v28 = vld [vmem:[#allocation8 + $0x30] ss:$8 sps:$4 sm:$0xff]  }
  0xb1   :  { %941 = vmatpush1.bf16.msra.mxu0 %v2466_v31  ;;  %v2496_v31 = vld [vmem:[#allocation8 + $0x44] ss:$8 sps:$4 sm:$0xff]  }
  0xb2   :  { %942 = vmatprep.subr.bf16.mxu0 %v2474_v35 }
  0xb4   :  { %337 = vmatmul.mubr.bf16.gmra.mrb[28].mxu0 %v125_v32 }
  0xb5   :  { %943 = vmatpush1.bf16.msra.mxu0 %v2472_v36 }
  0xb6   :  { %944 = vmatprep.subr.bf16.mxu0 %v2480_v39 }
  0xb9   :  { %945 = vmatpush1.bf16.msra.mxu0 %v2478_v40  ;;  %v2499_v40 = vld [vmem:[#allocation8 + $0x54] ss:$8 sps:$4 sm:$0xff]  }
 0x14f   :  { %v268_v49 = vpop.f32.mrb[0].mxu0 }
 0x150   :  { %v269_v50 = vadd.f32 %v268_v49, %v2900_v47  ;;  %v270_v51 = vpop.f32.mrb[1].mxu0 }
 0x151   :  { %v271_v52 = vadd.f32 %v270_v51, %v2903_v48  ;;  %v272_v53 = vpop.f32.mrb[2].mxu0 }
 0x152   :  { %v273_v54 = vadd.f32 %v272_v53, %v2900_v47  ;;  %v274_v55 = vpop.f32.mrb[3].mxu0  ;;  %v347_v57 = vmax.f32 %v269_v50, 0.0  ;;  %v2497_v50 = vld [vmem:[#allocation8 + $0x50] ss:$8 sps:$4 sm:$0xff]   ;;  %v2502_v53 = vld [vmem:[#allocation8 + $0x64] ss:$8 sps:$4 sm:$0xff]  }
 0x153   :  { %v275_v56 = vadd.f32 %v274_v55, %v2903_v48  ;;  %v348_v59 = vmax.f32 %v271_v52, 0.0 }
 0x154   :  { %v349_v58 = vmax.f32 %v273_v54, 0.0 }
 0x155   :  { %v350_v60 = vmax.f32 %v275_v56, 0.0 }
 0x156   :  { %v379_v61 = vpack.c.bf16 %v349_v58, %v347_v57 }
 0x157   :  { %v278_v62 = vpop.f32.mrb[4].mxu0  ;;  %v380_v63 = vpack.c.bf16 %v350_v60, %v348_v59  ;;  %v2500_v59 = vld [vmem:[#allocation8 + $0x60] ss:$8 sps:$4 sm:$0xff]  }
 0x158   :  { %v279_v2 = vadd.f32 %v278_v62, %v2900_v47  ;;  %v280_v3 = vpop.f32.mrb[5].mxu0  ;;  %v2505_v62 = vld [vmem:[#allocation8 + $0x74] ss:$8 sps:$4 sm:$0xff]  }
 0x159   :  { %v281_v5 = vadd.f32 %v280_v3, %v2903_v48  ;;  %v282_v6 = vpop.f32.mrb[6].mxu0  ;;  %833 = vmatprep.mubr.bf16.mxu1 %v380_v63  ;;  %946 = vmatprep.mubr.bf16.mxu0 %v380_v63 }
 0x15a   :  { %v283_v7 = vadd.f32 %v282_v6, %v2900_v47  ;;  %v284_v8 = vpop.f32.mrb[7].mxu0  ;;  %834 = vmatmul.mubr.bf16.vlgmr.msra.gmra.mrb[0].mxu1 %v379_v61  ;;  %947 = vmatmul.mubr.bf16.vlgmr.msra.gmra.mrb[32].mxu0 %v379_v61  ;;  %v351_v11 = vmax.f32 %v279_v2, 0.0 }
 0x15b   :  { %v285_v9 = vadd.f32 %v284_v8, %v2903_v48  ;;  %1520 = vmatpush1.bf16.msra.mxu1 %v2482_v1  ;;  %v352_v14 = vmax.f32 %v281_v5, 0.0  ;;  %v2503_v5 = vld [vmem:[#allocation8 + $0x70] ss:$8 sps:$4 sm:$0xff]   ;;  %v2508_v8 = vld [vmem:[#allocation8 + $0x84] ss:$8 sps:$4 sm:$0xff]  }
 0x15c   :  { %v353_v12 = vmax.f32 %v283_v7, 0.0  ;;  %1521 = vmatprep.subr.bf16.mxu1 %v2487_v4 }
 0x15d   :  { %v354_v15 = vmax.f32 %v285_v9, 0.0 }
 0x15e   :  { %v381_v16 = vpack.c.bf16 %v353_v12, %v351_v11 }
 0x15f   :  { %v382_v17 = vpack.c.bf16 %v354_v15, %v352_v14  ;;  %v288_v18 = vpop.f32.mrb[8].mxu0  ;;  %1522 = vmatpush1.bf16.msra.mxu1 %v2485_v10  ;;  %v2506_v14 = vld [vmem:[#allocation8 + $0x80] ss:$8 sps:$4 sm:$0xff]  }
 0x160   :  { %v289_v20 = vadd.f32 %v288_v18, %v2900_v47  ;;  %v290_v21 = vpop.f32.mrb[9].mxu0  ;;  %1523 = vmatprep.subr.bf16.mxu1 %v2490_v13 }
 0x161   :  { %v291_v23 = vadd.f32 %v290_v21, %v2903_v48  ;;  %v292_v24 = vpop.f32.mrb[10].mxu0  ;;  %843 = vmatprep.mubr.bf16.mxu1 %v382_v17  ;;  %956 = vmatprep.mubr.bf16.mxu0 %v382_v17  ;;  %v2511_v17 = vld [vmem:[#allocation8 + $0x94] ss:$8 sps:$4 sm:$0xff]  }
 0x162   :  { %v293_v25 = vadd.f32 %v292_v24, %v2900_v47  ;;  %v294_v26 = vpop.f32.mrb[11].mxu0  ;;  %844 = vmatmul.mubr.bf16.gmra.mrb[4].mxu1 %v381_v16  ;;  %957 = vmatmul.mubr.bf16.gmra.mrb[36].mxu0 %v381_v16  ;;  %v355_v29 = vmax.f32 %v289_v20, 0.0 }
 0x163   :  { %v295_v27 = vadd.f32 %v294_v26, %v2903_v48  ;;  %1524 = vmatpush1.bf16.msra.mxu1 %v2488_v19  ;;  %v356_v32 = vmax.f32 %v291_v23, 0.0  ;;  %v2509_v23 = vld [vmem:[#allocation8 + $0x90] ss:$8 sps:$4 sm:$0xff]   ;;  %v2514_v26 = vld [vmem:[#allocation8 + $0xa4] ss:$8 sps:$4 sm:$0xff]  }
 0x164   :  { %v357_v30 = vmax.f32 %v293_v25, 0.0  ;;  %1525 = vmatprep.subr.bf16.mxu1 %v2493_v22 }
 0x165   :  { %v358_v33 = vmax.f32 %v295_v27, 0.0 }
 0x166   :  { %v383_v34 = vpack.c.bf16 %v357_v30, %v355_v29 }
 0x167   :  { %v384_v35 = vpack.c.bf16 %v358_v33, %v356_v32  ;;  %v298_v36 = vpop.f32.mrb[12].mxu0  ;;  %1526 = vmatpush1.bf16.msra.mxu1 %v2491_v28  ;;  %v2512_v32 = vld [vmem:[#allocation8 + $0xa0] ss:$8 sps:$4 sm:$0xff]  }
 0x168   :  { %v299_v38 = vadd.f32 %v298_v36, %v2900_v47  ;;  %v300_v39 = vpop.f32.mrb[13].mxu0  ;;  %1527 = vmatprep.subr.bf16.mxu1 %v2496_v31 }
 0x169   :  { %v301_v41 = vadd.f32 %v300_v39, %v2903_v48  ;;  %v302_v0 = vpop.f32.mrb[14].mxu0  ;;  %853 = vmatprep.mubr.bf16.mxu1 %v384_v35  ;;  %966 = vmatprep.mubr.bf16.mxu0 %v384_v35  ;;  %v2517_v35 = vld [vmem:[#allocation8 + $0xb4] ss:$8 sps:$4 sm:$0xff]  }
 0x16a   :  { %v303_v42 = vadd.f32 %v302_v0, %v2900_v47  ;;  %v304_v45 = vpop.f32.mrb[15].mxu0  ;;  %854 = vmatmul.mubr.bf16.gmra.mrb[8].mxu1 %v383_v34  ;;  %967 = vmatmul.mubr.bf16.gmra.mrb[40].mxu0 %v383_v34  ;;  %v359_v51 = vmax.f32 %v299_v38, 0.0 }
 0x16b   :  { %v305_v49 = vadd.f32 %v304_v45, %v2903_v48  ;;  %1528 = vmatpush1.bf16.msra.mxu1 %v2494_v37  ;;  %v360_v54 = vmax.f32 %v301_v41, 0.0  ;;  %v2515_v41 = vld [vmem:[#allocation8 + $0xb0] ss:$8 sps:$4 sm:$0xff]   ;;  %v2520_v45 = vld [vmem:[#allocation8 + $0xc4] ss:$8 sps:$4 sm:$0xff]  }
 0x16c   :  { %v361_v52 = vmax.f32 %v303_v42, 0.0  ;;  %1529 = vmatprep.subr.bf16.mxu1 %v2499_v40 }
 0x16d   :  { %v362_v55 = vmax.f32 %v305_v49, 0.0 }
 0x16e   :  { %v385_v56 = vpack.c.bf16 %v361_v52, %v359_v51 }
 0x16f   :  { %v386_v57 = vpack.c.bf16 %v362_v55, %v360_v54  ;;  %v308_v58 = vpop.f32.mrb[16].mxu0  ;;  %1530 = vmatpush1.bf16.msra.mxu1 %v2497_v50  ;;  %v2518_v54 = vld [vmem:[#allocation8 + $0xc0] ss:$8 sps:$4 sm:$0xff]  }
 0x170   :  { %v309_v60 = vadd.f32 %v308_v58, %v2900_v47  ;;  %v310_v61 = vpop.f32.mrb[17].mxu0  ;;  %1531 = vmatprep.subr.bf16.mxu1 %v2502_v53 }
 0x171   :  { %v311_v63 = vadd.f32 %v310_v61, %v2903_v48  ;;  %v312_v1 = vpop.f32.mrb[18].mxu0  ;;  %863 = vmatprep.mubr.bf16.mxu1 %v386_v57  ;;  %976 = vmatprep.mubr.bf16.mxu0 %v386_v57  ;;  %v2523_v57 = vld [vmem:[#allocation8 + $0xd4] ss:$8 sps:$4 sm:$0xff]  }
 0x172   :  { %v313_v2 = vadd.f32 %v312_v1, %v2900_v47  ;;  %v314_v3 = vpop.f32.mrb[19].mxu0  ;;  %864 = vmatmul.mubr.bf16.gmra.mrb[12].mxu1 %v385_v56  ;;  %977 = vmatmul.mubr.bf16.gmra.mrb[44].mxu0 %v385_v56  ;;  %v363_v6 = vmax.f32 %v309_v60, 0.0 }
 0x173   :  { %v315_v4 = vadd.f32 %v314_v3, %v2903_v48  ;;  %1532 = vmatpush1.bf16.msra.mxu1 %v2500_v59  ;;  %v364_v9 = vmax.f32 %v311_v63, 0.0  ;;  %v2521_v63 = vld [vmem:[#allocation8 + $0xd0] ss:$8 sps:$4 sm:$0xff]  }
 0x174   :  { %v365_v7 = vmax.f32 %v313_v2, 0.0  ;;  %1533 = vmatprep.subr.bf16.mxu1 %v2505_v62 }
 0x175   :  { %v366_v10 = vmax.f32 %v315_v4, 0.0 }
 0x176   :  { %v387_v11 = vpack.c.bf16 %v365_v7, %v363_v6  ;;  %v2524_v7 = vld [vmem:[#allocation8 + $0xe0] ss:$8 sps:$4 sm:$0xff]  }
 0x177   :  { %v388_v12 = vpack.c.bf16 %v366_v10, %v364_v9  ;;  %v318_v13 = vpop.f32.mrb[20].mxu0  ;;  %1534 = vmatpush1.bf16.msra.mxu1 %v2503_v5  ;;  %v2532_v9 = vld [vmem:[#allocation8 + $0x104] ss:$8 sps:$4 sm:$0xff]   ;;  %v471_v10 = vsub.s32 2, %v2888_v43 }
 0x178   :  { %v319_v15 = vadd.f32 %v318_v13, %v2900_v47  ;;  %v320_v16 = vpop.f32.mrb[21].mxu0  ;;  %1535 = vmatprep.subr.bf16.mxu1 %v2508_v8  ;;  %v2529_v8 = vld [vmem:[#allocation8 + $0xf4] ss:$8 sps:$4 sm:$0xff]  }
 0x179   :  { %v321_v18 = vadd.f32 %v320_v16, %v2903_v48  ;;  %v322_v19 = vpop.f32.mrb[22].mxu0  ;;  %873 = vmatprep.mubr.bf16.mxu1 %v388_v12  ;;  %986 = vmatprep.mubr.bf16.mxu0 %v388_v12  ;;  %v475_v12 = vsub.s32 3, %v2888_v43 }
 0x17a   :  { %v323_v20 = vadd.f32 %v322_v19, %v2900_v47  ;;  %v324_v21 = vpop.f32.mrb[23].mxu0  ;;  %874 = vmatmul.mubr.bf16.gmra.mrb[16].mxu1 %v387_v11  ;;  %987 = vmatmul.mubr.bf16.gmra.mrb[48].mxu0 %v387_v11  ;;  %v367_v24 = vmax.f32 %v319_v15, 0.0  ;;  %v459_v11 = vld [vmem:[%s3136_s4] sm:$0xf] }
 0x17b   :  { %v325_v22 = vadd.f32 %v324_v21, %v2903_v48  ;;  %1536 = vmatpush1.bf16.msra.mxu1 %v2506_v14  ;;  %v368_v27 = vmax.f32 %v321_v18, 0.0  ;;  %v2943_v13 = vrot.slane %v459_v11, %v2891_v44  ;;  %v2945_v14 = vrot.slane %v459_v11, %v471_v10 }
 0x17c   :  { %v369_v25 = vmax.f32 %v323_v20, 0.0  ;;  %1537 = vmatprep.subr.bf16.mxu1 %v2511_v17  ;;  %v2948_v15 = vrot.slane %v459_v11, %v2897_v46  ;;  %v2950_v16 = vrot.slane %v459_v11, %v475_v12 }
 0x17d   :  { %v370_v28 = vmax.f32 %v325_v22, 0.0 }
 0x17e   :  { %v389_v29 = vpack.c.bf16 %v369_v25, %v367_v24 }
 0x17f   :  { %v390_v30 = vpack.c.bf16 %v370_v28, %v368_v27  ;;  %v328_v31 = vpop.f32.mrb[24].mxu0  ;;  %1538 = vmatpush1.bf16.msra.mxu1 %v2509_v23 }
 0x180   :  { %v329_v33 = vadd.f32 %v328_v31, %v2900_v47  ;;  %v330_v34 = vpop.f32.mrb[25].mxu0  ;;  %1539 = vmatprep.subr.bf16.mxu1 %v2514_v26  ;;  %v2579_v31 = vld [vmem:[#allocation10] sm:$0xff]  }
 0x181   :  { %v331_v36 = vadd.f32 %v330_v34, %v2903_v48  ;;  %v332_v37 = vpop.f32.mrb[26].mxu0  ;;  %883 = vmatprep.mubr.bf16.mxu1 %v390_v30  ;;  %996 = vmatprep.mubr.bf16.mxu0 %v390_v30  ;;  %v2578_v30 = vld [vmem:[#allocation10 + $0x40] sm:$0xff]   ;;  %v2580_v34 = vld [vmem:[#allocation10 + $0x48] sm:$0xff]  }
 0x182   :  { %v333_v38 = vadd.f32 %v332_v37, %v2900_v47  ;;  %v334_v39 = vpop.f32.mrb[27].mxu0  ;;  %884 = vmatmul.mubr.bf16.gmra.mrb[20].mxu1 %v389_v29  ;;  %997 = vmatmul.mubr.bf16.gmra.mrb[52].mxu0 %v389_v29  ;;  %v371_v0 = vmax.f32 %v329_v33, 0.0 }
 0x183   :  { %v335_v40 = vadd.f32 %v334_v39, %v2903_v48  ;;  %1540 = vmatpush1.bf16.msra.mxu1 %v2512_v32  ;;  %v372_v49 = vmax.f32 %v331_v36, 0.0  ;;  %2221 = vmatprep.subr.bf16.mxu0 %v2578_v30 }
 0x184   :  { %v373_v42 = vmax.f32 %v333_v38, 0.0  ;;  %1541 = vmatprep.subr.bf16.mxu1 %v2517_v35  ;;  %2222 = vmatpush3.bf16.msra.mxu0 %v2579_v31 }
 0x185   :  { %v374_v50 = vmax.f32 %v335_v40, 0.0  ;;  %2223 = vmatprep.subr.bf16.mxu0 %v2580_v34  ;;  %v2541_v34 = vld [vmem:[#allocation8 + $0x134] ss:$8 sps:$4 sm:$0xff]  }
 0x186   :  { %v391_v51 = vpack.c.bf16 %v373_v42, %v371_v0  ;;  %v2581_v42 = vld [vmem:[#allocation10 + $0x8] sm:$0xff]  }
 0x187   :  { %v392_v52 = vpack.c.bf16 %v374_v50, %v372_v49  ;;  %v338_v53 = vpop.f32.mrb[28].mxu0  ;;  %1542 = vmatpush1.bf16.msra.mxu1 %v2515_v41  ;;  %v2582_v50 = vld [vmem:[#allocation10 + $0x50] sm:$0xff]  }
 0x188   :  { %v339_v55 = vadd.f32 %v338_v53, %v2900_v47  ;;  %v340_v56 = vpop.f32.mrb[29].mxu0  ;;  %1543 = vmatprep.subr.bf16.mxu1 %v2520_v45  ;;  %2224 = vmatpush3.bf16.msra.mxu0 %v2581_v42 }
 0x189   :  { %v341_v58 = vadd.f32 %v340_v56, %v2903_v48  ;;  %v342_v59 = vpop.f32.mrb[30].mxu0  ;;  %893 = vmatprep.mubr.bf16.mxu1 %v392_v52  ;;  %1006 = vmatprep.mubr.bf16.mxu0 %v392_v52 }
 0x18a   :  { %v343_v60 = vadd.f32 %v342_v59, %v2900_v47  ;;  %v344_v61 = vpop.f32.mrb[31].mxu0  ;;  %894 = vmatmul.mubr.bf16.gmra.mrb[24].mxu1 %v391_v51  ;;  %1007 = vmatmul.mubr.bf16.gmra.mrb[56].mxu0 %v391_v51  ;;  %v375_v1 = vmax.f32 %v339_v55, 0.0  ;;  %v2526_v47 = vld [vmem:[#allocation8 + $0xe4] ss:$8 sps:$4 sm:$0xff]   ;;  %v2530_v55 = vld [vmem:[#allocation8 + $0x100] ss:$8 sps:$4 sm:$0xff]  }
 0x18b   :  { %v345_v62 = vadd.f32 %v344_v61, %v2903_v48  ;;  %1544 = vmatpush1.bf16.msra.mxu1 %v2518_v54  ;;  %v376_v3 = vmax.f32 %v341_v58, 0.0  ;;  %v2527_v48 = vld [vmem:[#allocation8 + $0xf0] ss:$8 sps:$4 sm:$0xff]   ;;  %2225 = vmatprep.subr.bf16.mxu0 %v2582_v50 }
 0x18c   :  { %v377_v2 = vmax.f32 %v343_v60, 0.0  ;;  %1545 = vmatprep.subr.bf16.mxu1 %v2523_v57  ;;  %v2535_v60 = vld [vmem:[#allocation8 + $0x114] ss:$8 sps:$4 sm:$0xff]  }
 0x18d   :  { %v378_v4 = vmax.f32 %v345_v62, 0.0 }
 0x18e   :  { %v393_v5 = vpack.c.bf16 %v377_v2, %v375_v1  ;;  %v2583_v2 = vld [vmem:[#allocation10 + $0x10] sm:$0xff]  }
 0x18f   :  { %v394_v6 = vpack.c.bf16 %v378_v4, %v376_v3  ;;  %1546 = vmatpush1.bf16.msra.mxu1 %v2521_v63  ;;  %2226 = vmatpush3.bf16.msra.mxu0 %v2583_v2 }
 0x190   :  { %1547 = vmatprep.subr.bf16.mxu1 %v2526_v47  ;;  %v2584_v47 = vld [vmem:[#allocation10 + $0x58] sm:$0xff]  }
 0x191   :  { %903 = vmatprep.mubr.bf16.mxu1 %v394_v6  ;;  %1016 = vmatprep.mubr.bf16.mxu0 %v394_v6 }
 0x192   :  { %904 = vmatmul.mubr.bf16.gmra.mrb[28].mxu1 %v393_v5  ;;  %1017 = vmatmul.mubr.bf16.gmra.mrb[60].mxu0 %v393_v5 }
 0x193   :  { %1548 = vmatpush1.bf16.msra.mxu1 %v2524_v7  ;;  %2227 = vmatprep.subr.bf16.mxu0 %v2584_v47 }
 0x194   :  { %1549 = vmatprep.subr.bf16.mxu1 %v2529_v8 }
 0x197   :  { %1550 = vmatpush1.bf16.msra.mxu1 %v2527_v48  ;;  %v2533_v48 = vld [vmem:[#allocation8 + $0x110] ss:$8 sps:$4 sm:$0xff]  }
 0x198   :  { %1632 = vmatprep.subr.bf16.mxu1 %v2532_v9 }
 0x22d   :  { %v835_v17 = vpop.f32.mrb[0].mxu1  ;;  %v948_v18 = vpop.f32.mrb[32].mxu0 }
 0x22e   :  { %v836_v19 = vadd.f32 %v835_v17, %v2943_v13  ;;  %v949_v20 = vadd.f32 %v948_v18, %v2945_v14  ;;  %v837_v21 = vpop.f32.mrb[1].mxu1  ;;  %v950_v22 = vpop.f32.mrb[33].mxu0  ;;  %v2538_v17 = vld [vmem:[#allocation8 + $0x124] ss:$8 sps:$4 sm:$0xff]  }
 0x22f   :  { %v838_v43 = vadd.f32 %v837_v21, %v2948_v15  ;;  %v951_v23 = vadd.f32 %v950_v22, %v2950_v16  ;;  %v839_v24 = vpop.f32.mrb[2].mxu1  ;;  %v952_v25 = vpop.f32.mrb[34].mxu0  ;;  %v2585_v22 = vld [vmem:[#allocation10 + $0x18] sm:$0xff]  }
 0x230   :  { %v840_v26 = vadd.f32 %v839_v24, %v2943_v13  ;;  %v953_v27 = vadd.f32 %v952_v25, %v2945_v14  ;;  %v841_v28 = vpop.f32.mrb[3].mxu1  ;;  %v954_v29 = vpop.f32.mrb[35].mxu0  ;;  %v1027_v35 = vmax.f32 %v836_v19, 0.0  ;;  %v1029_v36 = vmax.f32 %v949_v20, 0.0  ;;  %v2586_v24 = vld [vmem:[#allocation10 + $0x60] sm:$0xff]   ;;  %2228 = vmatpush3.bf16.msra.mxu0 %v2585_v22 }
 0x231   :  { %v842_v32 = vadd.f32 %v841_v28, %v2948_v15  ;;  %v955_v33 = vadd.f32 %v954_v29, %v2950_v16  ;;  %v1028_v39 = vmax.f32 %v838_v43, 0.0  ;;  %v1030_v40 = vmax.f32 %v951_v23, 0.0  ;;  %v2536_v29 = vld [vmem:[#allocation8 + $0x120] ss:$8 sps:$4 sm:$0xff]   ;;  %2229 = vmatprep.subr.bf16.mxu0 %v2586_v24 }
 0x232   :  { %v1031_v37 = vmax.f32 %v840_v26, 0.0  ;;  %v1033_v38 = vmax.f32 %v953_v27, 0.0 }
 0x233   :  { %v1032_v41 = vmax.f32 %v842_v32, 0.0  ;;  %v1034_v0 = vmax.f32 %v955_v33, 0.0 }
 0x234   :  { %v1091_v45 = vpack.c.bf16 %v1031_v37, %v1027_v35  ;;  %v2960_v49 = vpack.c.bf16 %v1033_v38, %v1029_v36 }
 0x235   :  { %v1092_v51 = vpack.c.bf16 %v1032_v41, %v1028_v39  ;;  %v2962_v52 = vpack.c.bf16 %v1034_v0, %v1030_v40  ;;  %v845_v53 = vpop.f32.mrb[4].mxu1  ;;  %v958_v54 = vpop.f32.mrb[36].mxu0  ;;  %v2587_v39 = vld [vmem:[#allocation10 + $0x20] sm:$0xff]  }
 0x236   :  { %v846_v56 = vadd.f32 %v845_v53, %v2943_v13  ;;  %v959_v57 = vadd.f32 %v958_v54, %v2945_v14  ;;  %v847_v58 = vpop.f32.mrb[5].mxu1  ;;  %v960_v59 = vpop.f32.mrb[37].mxu0  ;;  %v2539_v53 = vld [vmem:[#allocation8 + $0x130] ss:$8 sps:$4 sm:$0xff]   ;;  %2230 = vmatpush3.bf16.msra.mxu0 %v2587_v39 }
 0x237   :  { %v848_v61 = vadd.f32 %v847_v58, %v2948_v15  ;;  %v961_v62 = vadd.f32 %v960_v59, %v2950_v16  ;;  %v849_v63 = vpop.f32.mrb[6].mxu1  ;;  %v962_v1 = vpop.f32.mrb[38].mxu0  ;;  %1551 = vmatprep.mubr.bf16.mxu1 %v1092_v51  ;;  %v2544_v58 = vld [vmem:[#allocation8 + $0x144] ss:$8 sps:$4 sm:$0xff]  }
 0x238   :  { %v850_v3 = vadd.f32 %v849_v63, %v2943_v13  ;;  %v963_v4 = vadd.f32 %v962_v1, %v2945_v14  ;;  %v851_v5 = vpop.f32.mrb[7].mxu1  ;;  %v964_v6 = vpop.f32.mrb[39].mxu0  ;;  %1552 = vmatmul.mubr.bf16.vlgmr.msra.gmra.mrb[32].mxu1 %v1091_v45  ;;  %v1035_v9 = vmax.f32 %v846_v56, 0.0  ;;  %v1037_v10 = vmax.f32 %v959_v57, 0.0  ;;  %v2588_v45 = vld [vmem:[#allocation10 + $0x68] sm:$0xff]  }
 0x239   :  { %v852_v7 = vadd.f32 %v851_v5, %v2948_v15  ;;  %v965_v8 = vadd.f32 %v964_v6, %v2950_v16  ;;  %1633 = vmatpush1.bf16.msra.mxu1 %v2530_v55  ;;  %v1036_v18 = vmax.f32 %v848_v61, 0.0  ;;  %v1038_v19 = vmax.f32 %v961_v62, 0.0  ;;  %v2589_v63 = vld [vmem:[#allocation10 + $0x28] sm:$0xff]   ;;  %2231 = vmatprep.subr.bf16.mxu0 %v2588_v45 }
 0x23a   :  { %v1039_v11 = vmax.f32 %v850_v3, 0.0  ;;  %v1041_v12 = vmax.f32 %v963_v4, 0.0  ;;  %1634 = vmatprep.subr.bf16.mxu1 %v2535_v60  ;;  %v2590_v3 = vld [vmem:[#allocation10 + $0x70] sm:$0xff]   ;;  %2232 = vmatpush3.bf16.msra.mxu0 %v2589_v63  ;;  %v2548_v45 = vld [vmem:[#allocation8 + $0x160] ss:$8 sps:$4 sm:$0xff]  }
 0x23b   :  { %v1040_v20 = vmax.f32 %v852_v7, 0.0  ;;  %v1042_v21 = vmax.f32 %v965_v8, 0.0  ;;  %v2542_v7 = vld [vmem:[#allocation8 + $0x140] ss:$8 sps:$4 sm:$0xff]   ;;  %2233 = vmatprep.subr.bf16.mxu0 %v2590_v3 }
 0x23c   :  { %v1095_v43 = vpack.c.bf16 %v1039_v11, %v1035_v9  ;;  %v2972_v23 = vpack.c.bf16 %v1041_v12, %v1037_v10  ;;  %v2547_v11 = vld [vmem:[#allocation8 + $0x154] ss:$8 sps:$4 sm:$0xff]  }
 0x23d   :  { %v1096_v25 = vpack.c.bf16 %v1040_v20, %v1036_v18  ;;  %v2974_v26 = vpack.c.bf16 %v1042_v21, %v1038_v19  ;;  %1635 = vmatpush1.bf16.msra.mxu1 %v2533_v48  ;;  %v855_v27 = vpop.f32.mrb[8].mxu1  ;;  %v968_v28 = vpop.f32.mrb[40].mxu0  ;;  %v2591_v20 = vld [vmem:[#allocation10 + $0x30] sm:$0xff]  }
 0x23e   :  { %v856_v30 = vadd.f32 %v855_v27, %v2943_v13  ;;  %v969_v31 = vadd.f32 %v968_v28, %v2945_v14  ;;  %v857_v32 = vpop.f32.mrb[9].mxu1  ;;  %v970_v33 = vpop.f32.mrb[41].mxu0  ;;  %1636 = vmatprep.subr.bf16.mxu1 %v2538_v17  ;;  %v2545_v28 = vld [vmem:[#allocation8 + $0x150] ss:$8 sps:$4 sm:$0xff]   ;;  %2234 = vmatpush3.bf16.msra.mxu0 %v2591_v20 }
 0x23f   :  { %v858_v35 = vadd.f32 %v857_v32, %v2948_v15  ;;  %v971_v36 = vadd.f32 %v970_v33, %v2950_v16  ;;  %v859_v37 = vpop.f32.mrb[10].mxu1  ;;  %v972_v38 = vpop.f32.mrb[42].mxu0  ;;  %1561 = vmatprep.mubr.bf16.mxu1 %v1096_v25  ;;  %v2550_v33 = vld [vmem:[#allocation8 + $0x164] ss:$8 sps:$4 sm:$0xff]  }
 0x240   :  { %v860_v40 = vadd.f32 %v859_v37, %v2943_v13  ;;  %v973_v41 = vadd.f32 %v972_v38, %v2945_v14  ;;  %v861_v0 = vpop.f32.mrb[11].mxu1  ;;  %v974_v42 = vpop.f32.mrb[43].mxu0  ;;  %1562 = vmatmul.mubr.bf16.gmra.mrb[36].mxu1 %v1095_v43  ;;  %v1043_v54 = vmax.f32 %v856_v30, 0.0  ;;  %v1045_v55 = vmax.f32 %v969_v31, 0.0 }
 0x241   :  { %v862_v50 = vadd.f32 %v861_v0, %v2948_v15  ;;  %v975_v51 = vadd.f32 %v974_v42, %v2950_v16  ;;  %1637 = vmatpush1.bf16.msra.mxu1 %v2536_v29  ;;  %v1044_v59 = vmax.f32 %v858_v35, 0.0  ;;  %v1046_v60 = vmax.f32 %v971_v36, 0.0 }
 0x242   :  { %v1047_v56 = vmax.f32 %v860_v40, 0.0  ;;  %v1049_v57 = vmax.f32 %v973_v41, 0.0  ;;  %1638 = vmatprep.subr.bf16.mxu1 %v2541_v34 }
 0x243   :  { %v1048_v61 = vmax.f32 %v862_v50, 0.0  ;;  %v1050_v62 = vmax.f32 %v975_v51, 0.0 }
 0x244   :  { %v1099_v1 = vpack.c.bf16 %v1047_v56, %v1043_v54  ;;  %v2984_v2 = vpack.c.bf16 %v1049_v57, %v1045_v55  ;;  %v2553_v55 = vld [vmem:[#allocation8 + $0x174] ss:$8 sps:$4 sm:$0xff]  }
 0x245   :  { %v1100_v4 = vpack.c.bf16 %v1048_v61, %v1044_v59  ;;  %v2986_v5 = vpack.c.bf16 %v1050_v62, %v1046_v60  ;;  %1639 = vmatpush1.bf16.msra.mxu1 %v2539_v53  ;;  %v865_v6 = vpop.f32.mrb[12].mxu1  ;;  %v978_v47 = vpop.f32.mrb[44].mxu0 }
 0x246   :  { %v866_v8 = vadd.f32 %v865_v6, %v2943_v13  ;;  %v979_v48 = vadd.f32 %v978_v47, %v2945_v14  ;;  %v867_v9 = vpop.f32.mrb[13].mxu1  ;;  %v980_v10 = vpop.f32.mrb[45].mxu0  ;;  %1640 = vmatprep.subr.bf16.mxu1 %v2544_v58 }
 0x247   :  { %v868_v12 = vadd.f32 %v867_v9, %v2948_v15  ;;  %v981_v17 = vadd.f32 %v980_v10, %v2950_v16  ;;  %v869_v18 = vpop.f32.mrb[14].mxu1  ;;  %v982_v19 = vpop.f32.mrb[46].mxu0  ;;  %1571 = vmatprep.mubr.bf16.mxu1 %v1100_v4  ;;  %v2551_v4 = vld [vmem:[#allocation8 + $0x170] ss:$8 sps:$4 sm:$0xff]  }
 0x248   :  { %v870_v21 = vadd.f32 %v869_v18, %v2943_v13  ;;  %v983_v22 = vadd.f32 %v982_v19, %v2945_v14  ;;  %v871_v43 = vpop.f32.mrb[15].mxu1  ;;  %v984_v24 = vpop.f32.mrb[47].mxu0  ;;  %1572 = vmatmul.mubr.bf16.gmra.mrb[40].mxu1 %v1099_v1  ;;  %v1051_v29 = vmax.f32 %v866_v8, 0.0  ;;  %v1053_v30 = vmax.f32 %v979_v48, 0.0  ;;  %v2556_v48 = vld [vmem:[#allocation8 + $0x184] ss:$8 sps:$4 sm:$0xff]  }
 0x249   :  { %v872_v25 = vadd.f32 %v871_v43, %v2948_v15  ;;  %v985_v27 = vadd.f32 %v984_v24, %v2950_v16  ;;  %1641 = vmatpush1.bf16.msra.mxu1 %v2542_v7  ;;  %v1052_v34 = vmax.f32 %v868_v12, 0.0  ;;  %v1054_v35 = vmax.f32 %v981_v17, 0.0  ;;  %v2554_v43 = vld [vmem:[#allocation8 + $0x180] ss:$8 sps:$4 sm:$0xff]  }
 0x24a   :  { %v1055_v31 = vmax.f32 %v870_v21, 0.0  ;;  %v1057_v32 = vmax.f32 %v983_v22, 0.0  ;;  %1642 = vmatprep.subr.bf16.mxu1 %v2547_v11 }
 0x24b   :  { %v1056_v36 = vmax.f32 %v872_v25, 0.0  ;;  %v1058_v37 = vmax.f32 %v985_v27, 0.0 }
 0x24c   :  { %v1103_v38 = vpack.c.bf16 %v1055_v31, %v1051_v29  ;;  %v2996_v39 = vpack.c.bf16 %v1057_v32, %v1053_v30  ;;  %v2559_v29 = vld [vmem:[#allocation8 + $0x194] ss:$8 sps:$4 sm:$0xff]  }
 0x24d   :  { %v1104_v40 = vpack.c.bf16 %v1056_v36, %v1052_v34  ;;  %v2998_v41 = vpack.c.bf16 %v1058_v37, %v1054_v35  ;;  %1643 = vmatpush1.bf16.msra.mxu1 %v2545_v28  ;;  %v875_v0 = vpop.f32.mrb[16].mxu1  ;;  %v988_v42 = vpop.f32.mrb[48].mxu0 }
 0x24e   :  { %v876_v50 = vadd.f32 %v875_v0, %v2943_v13  ;;  %v989_v51 = vadd.f32 %v988_v42, %v2945_v14  ;;  %v877_v53 = vpop.f32.mrb[17].mxu1  ;;  %v990_v54 = vpop.f32.mrb[49].mxu0  ;;  %1644 = vmatprep.subr.bf16.mxu1 %v2550_v33  ;;  %v2557_v0 = vld [vmem:[#allocation8 + $0x190] ss:$8 sps:$4 sm:$0xff]  }
 0x24f   :  { %v878_v56 = vadd.f32 %v877_v53, %v2948_v15  ;;  %v991_v57 = vadd.f32 %v990_v54, %v2950_v16  ;;  %v879_v58 = vpop.f32.mrb[18].mxu1  ;;  %v992_v59 = vpop.f32.mrb[50].mxu0  ;;  %1581 = vmatprep.mubr.bf16.mxu1 %v1104_v40  ;;  %v2562_v53 = vld [vmem:[#allocation8 + $0x1a4] ss:$8 sps:$4 sm:$0xff]  }
 0x250   :  { %v880_v60 = vadd.f32 %v879_v58, %v2943_v13  ;;  %v993_v61 = vadd.f32 %v992_v59, %v2945_v14  ;;  %v881_v62 = vpop.f32.mrb[19].mxu1  ;;  %v994_v63 = vpop.f32.mrb[51].mxu0  ;;  %1582 = vmatmul.mubr.bf16.gmra.mrb[44].mxu1 %v1103_v38  ;;  %v1059_v6 = vmax.f32 %v876_v50, 0.0  ;;  %v1061_v47 = vmax.f32 %v989_v51, 0.0 }
 0x251   :  { %v882_v1 = vadd.f32 %v881_v62, %v2948_v15  ;;  %v995_v3 = vadd.f32 %v994_v63, %v2950_v16  ;;  %1645 = vmatpush1.bf16.msra.mxu1 %v2548_v45  ;;  %v1060_v9 = vmax.f32 %v878_v56, 0.0  ;;  %v1062_v10 = vmax.f32 %v991_v57, 0.0 }
 0x252   :  { %v1063_v7 = vmax.f32 %v880_v60, 0.0  ;;  %v1065_v8 = vmax.f32 %v993_v61, 0.0  ;;  %1646 = vmatprep.subr.bf16.mxu1 %v2553_v55 }
 0x253   :  { %v1064_v11 = vmax.f32 %v882_v1, 0.0  ;;  %v1066_v12 = vmax.f32 %v995_v3, 0.0  ;;  %v2560_v1 = vld [vmem:[#allocation8 + $0x1a0] ss:$8 sps:$4 sm:$0xff]  }
 0x254   :  { %v1107_v17 = vpack.c.bf16 %v1063_v7, %v1059_v6  ;;  %v3008_v18 = vpack.c.bf16 %v1065_v8, %v1061_v47  ;;  %v2565_v7 = vld [vmem:[#allocation8 + $0x1b4] ss:$8 sps:$4 sm:$0xff]  }
 0x255   :  { %v1108_v19 = vpack.c.bf16 %v1064_v11, %v1060_v9  ;;  %v3010_v20 = vpack.c.bf16 %v1066_v12, %v1062_v10  ;;  %1647 = vmatpush1.bf16.msra.mxu1 %v2551_v4  ;;  %v885_v21 = vpop.f32.mrb[20].mxu1  ;;  %v998_v22 = vpop.f32.mrb[52].mxu0 }
 0x256   :  { %v886_v24 = vadd.f32 %v885_v21, %v2943_v13  ;;  %v999_v25 = vadd.f32 %v998_v22, %v2945_v14  ;;  %v887_v27 = vpop.f32.mrb[21].mxu1  ;;  %v1000_v28 = vpop.f32.mrb[53].mxu0  ;;  %1648 = vmatprep.subr.bf16.mxu1 %v2556_v48 }
 0x257   :  { %v888_v30 = vadd.f32 %v887_v27, %v2948_v15  ;;  %v1001_v31 = vadd.f32 %v1000_v28, %v2950_v16  ;;  %v889_v32 = vpop.f32.mrb[22].mxu1  ;;  %v1002_v33 = vpop.f32.mrb[54].mxu0  ;;  %1591 = vmatprep.mubr.bf16.mxu1 %v1108_v19 }
 0x258   :  { %v890_v34 = vadd.f32 %v889_v32, %v2943_v13  ;;  %v1003_v35 = vadd.f32 %v1002_v33, %v2945_v14  ;;  %v891_v36 = vpop.f32.mrb[23].mxu1  ;;  %v1004_v37 = vpop.f32.mrb[55].mxu0  ;;  %1592 = vmatmul.mubr.bf16.gmra.mrb[48].mxu1 %v1107_v17  ;;  %v1067_v42 = vmax.f32 %v886_v24, 0.0  ;;  %v1069_v45 = vmax.f32 %v999_v25, 0.0 }
 0x259   :  { %v892_v38 = vadd.f32 %v891_v36, %v2948_v15  ;;  %v1005_v40 = vadd.f32 %v1004_v37, %v2950_v16  ;;  %1649 = vmatpush1.bf16.msra.mxu1 %v2554_v43  ;;  %v1068_v54 = vmax.f32 %v888_v30, 0.0  ;;  %v1070_v55 = vmax.f32 %v1001_v31, 0.0  ;;  %v2563_v43 = vld [vmem:[#allocation8 + $0x1b0] ss:$8 sps:$4 sm:$0xff]  }
 0x25a   :  { %v1071_v50 = vmax.f32 %v890_v34, 0.0  ;;  %v1073_v51 = vmax.f32 %v1003_v35, 0.0  ;;  %1650 = vmatprep.subr.bf16.mxu1 %v2559_v29  ;;  %v2568_v29 = vld [vmem:[#allocation8 + $0x1c4] ss:$8 sps:$4 sm:$0xff]  }
 0x25b   :  { %v1072_v56 = vmax.f32 %v892_v38, 0.0  ;;  %v1074_v57 = vmax.f32 %v1005_v40, 0.0 }
 0x25c   :  { %v1111_v58 = vpack.c.bf16 %v1071_v50, %v1067_v42  ;;  %v3020_v59 = vpack.c.bf16 %v1073_v51, %v1069_v45 }
 0x25d   :  { %v1112_v60 = vpack.c.bf16 %v1072_v56, %v1068_v54  ;;  %v3022_v61 = vpack.c.bf16 %v1074_v57, %v1070_v55  ;;  %1651 = vmatpush1.bf16.msra.mxu1 %v2557_v0  ;;  %v895_v62 = vpop.f32.mrb[24].mxu1  ;;  %v1008_v63 = vpop.f32.mrb[56].mxu0  ;;  %v2566_v0 = vld [vmem:[#allocation8 + $0x1c0] ss:$8 sps:$4 sm:$0xff]  }
 0x25e   :  { %v896_v3 = vadd.f32 %v895_v62, %v2943_v13  ;;  %v1009_v4 = vadd.f32 %v1008_v63, %v2945_v14  ;;  %v897_v6 = vpop.f32.mrb[25].mxu1  ;;  %v1010_v47 = vpop.f32.mrb[57].mxu0  ;;  %1652 = vmatprep.subr.bf16.mxu1 %v2562_v53  ;;  %v2571_v53 = vld [vmem:[#allocation8 + $0x1d4] ss:$8 sps:$4 sm:$0xff]  }
 0x25f   :  { %v898_v8 = vadd.f32 %v897_v6, %v2948_v15  ;;  %v1011_v48 = vadd.f32 %v1010_v47, %v2950_v16  ;;  %v899_v9 = vpop.f32.mrb[26].mxu1  ;;  %v1012_v10 = vpop.f32.mrb[58].mxu0  ;;  %1601 = vmatprep.mubr.bf16.mxu1 %v1112_v60 }
 0x260   :  { %v900_v11 = vadd.f32 %v899_v9, %v2943_v13  ;;  %v1013_v12 = vadd.f32 %v1012_v10, %v2945_v14  ;;  %v901_v17 = vpop.f32.mrb[27].mxu1  ;;  %v1014_v19 = vpop.f32.mrb[59].mxu0  ;;  %1602 = vmatmul.mubr.bf16.gmra.mrb[52].mxu1 %v1111_v58  ;;  %v1075_v24 = vmax.f32 %v896_v3, 0.0  ;;  %v1077_v25 = vmax.f32 %v1009_v4, 0.0  ;;  %v2569_v4 = vld [vmem:[#allocation8 + $0x1d0] ss:$8 sps:$4 sm:$0xff]  }
 0x261   :  { %v902_v21 = vadd.f32 %v901_v17, %v2948_v15  ;;  %v1015_v22 = vadd.f32 %v1014_v19, %v2950_v16  ;;  %1653 = vmatpush1.bf16.msra.mxu1 %v2560_v1  ;;  %v1076_v30 = vmax.f32 %v898_v8, 0.0  ;;  %v1078_v31 = vmax.f32 %v1011_v48, 0.0  ;;  %v2574_v48 = vld [vmem:[#allocation8 + $0x1e4] ss:$8 sps:$4 sm:$0xff]  }
 0x262   :  { %v1079_v27 = vmax.f32 %v900_v11, 0.0  ;;  %v1081_v28 = vmax.f32 %v1013_v12, 0.0  ;;  %1654 = vmatprep.subr.bf16.mxu1 %v2565_v7 }
 0x263   :  { %v1080_v32 = vmax.f32 %v902_v21, 0.0  ;;  %v1082_v33 = vmax.f32 %v1015_v22, 0.0  ;;  %v2575_v21 = vld [vmem:[#allocation8 + $0x1f0] ss:$8 sps:$4 sm:$0xff]  }
 0x264   :  { %v1115_v34 = vpack.c.bf16 %v1079_v27, %v1075_v24  ;;  %v3032_v35 = vpack.c.bf16 %v1081_v28, %v1077_v25 }
 0x265   :  { %v1116_v36 = vpack.c.bf16 %v1080_v32, %v1076_v30  ;;  %v1118_v37 = vpack.c.bf16 %v1082_v33, %v1078_v31  ;;  %1655 = vmatpush1.bf16.msra.mxu1 %v2563_v43  ;;  %v905_v38 = vpop.f32.mrb[28].mxu1  ;;  %v1018_v40 = vpop.f32.mrb[60].mxu0 }
 0x266   :  { %v906_v42 = vadd.f32 %v905_v38, %v2943_v13  ;;  %v1019_v45 = vadd.f32 %v1018_v40, %v2945_v14  ;;  %v907_v50 = vpop.f32.mrb[29].mxu1  ;;  %v1020_v51 = vpop.f32.mrb[61].mxu0  ;;  %1656 = vmatprep.subr.bf16.mxu1 %v2568_v29 }
 0x267   :  { %v908_v54 = vadd.f32 %v907_v50, %v2948_v15  ;;  %v1021_v55 = vadd.f32 %v1020_v51, %v2950_v16  ;;  %v909_v56 = vpop.f32.mrb[30].mxu1  ;;  %v1022_v57 = vpop.f32.mrb[62].mxu0  ;;  %1611 = vmatprep.mubr.bf16.mxu1 %v1116_v36 }
 0x268   :  { %v910_v58 = vadd.f32 %v909_v56, %v2943_v13  ;;  %v1023_v60 = vadd.f32 %v1022_v57, %v2945_v14  ;;  %v911_v62 = vpop.f32.mrb[31].mxu1  ;;  %v1024_v63 = vpop.f32.mrb[63].mxu0  ;;  %1612 = vmatmul.mubr.bf16.gmra.mrb[56].mxu1 %v1115_v34  ;;  %v1083_v6 = vmax.f32 %v906_v42, 0.0  ;;  %v1085_v47 = vmax.f32 %v1019_v45, 0.0 }
 0x269   :  { %v912_v1 = vadd.f32 %v911_v62, %v2948_v15  ;;  %v1025_v3 = vadd.f32 %v1024_v63, %v2950_v16  ;;  %1657 = vmatpush1.bf16.msra.mxu1 %v2566_v0  ;;  %v1084_v9 = vmax.f32 %v908_v54, 0.0  ;;  %v1086_v10 = vmax.f32 %v1021_v55, 0.0  ;;  %v2572_v15 = vld [vmem:[#allocation8 + $0x1e0] ss:$8 sps:$4 sm:$0xff]   ;;  %v2577_v16 = vld [vmem:[#allocation8 + $0x1f4] ss:$8 sps:$4 sm:$0xff]  }
 0x26a   :  { %v1087_v7 = vmax.f32 %v910_v58, 0.0  ;;  %v1089_v8 = vmax.f32 %v1023_v60, 0.0  ;;  %1658 = vmatprep.subr.bf16.mxu1 %v2571_v53 }
 0x26b   :  { %v1088_v13 = vmax.f32 %v912_v1, 0.0  ;;  %v1090_v11 = vmax.f32 %v1025_v3, 0.0 }
 0x26c   :  { %v1119_v14 = vpack.c.bf16 %v1087_v7, %v1083_v6  ;;  %v1121_v12 = vpack.c.bf16 %v1089_v8, %v1085_v47 }
 0x26d   :  { %v1120_v17 = vpack.c.bf16 %v1088_v13, %v1084_v9  ;;  %v1122_v19 = vpack.c.bf16 %v1090_v11, %v1086_v10  ;;  %1659 = vmatpush1.bf16.msra.mxu1 %v2569_v4 }
 0x26e   :  { %1660 = vmatprep.subr.bf16.mxu1 %v2574_v48 }
 0x26f   :  { %1621 = vmatprep.mubr.bf16.mxu1 %v1120_v17 }
 0x270   :  { %1622 = vmatmul.mubr.bf16.gmra.mrb[60].mxu1 %v1119_v14 }
 0x271   :  { %1661 = vmatpush1.bf16.msra.mxu1 %v2572_v15  ;;  %1664 = vmatprep.mubr.bf16.mxu1 %v2962_v52  ;;  %v2593_v52 = vld [vmem:[#allocation10 + $0x38] sm:$0xff]  }
 0x272   :  { %1662 = vmatprep.subr.bf16.mxu1 %v2577_v16 }
 0x275   :  { %1663 = vmatpush1.bf16.msra.mxu1 %v2575_v21 }
 0x278   :  { %1665 = vmatmul.mubr.bf16.vlgmr.msra.gmra.mrb[32].mxu1 %v2960_v49  ;;  %v2592_v49 = vld [vmem:[#allocation10 + $0x78] sm:$0xff]  }
 0x279   :  { %1674 = vmatprep.mubr.bf16.mxu1 %v2974_v26  ;;  %2235 = vmatprep.subr.bf16.mxu0 %v2592_v49 }
 0x27a   :  { %2236 = vmatpush3.bf16.msra.mxu0 %v2593_v52 }
 0x280   :  { %1675 = vmatmul.mubr.bf16.gmra.mrb[36].mxu1 %v2972_v23  ;;  %v1187_v23 = vld [vmem:[%s3138_s6] sm:$0x3] }
 0x281   :  { %1684 = vmatprep.mubr.bf16.mxu1 %v2986_v5  ;;  %v3059_v26 = vrot.slane %v1187_v23, %v2891_v44 }
 0x288   :  { %1685 = vmatmul.mubr.bf16.gmra.mrb[40].mxu1 %v2984_v2  ;;  %v3062_v2 = vrot.slane %v1187_v23, %v2897_v46 }
 0x289   :  { %1694 = vmatprep.mubr.bf16.mxu1 %v2998_v41 }
 0x290   :  { %1695 = vmatmul.mubr.bf16.gmra.mrb[44].mxu1 %v2996_v39 }
 0x291   :  { %1704 = vmatprep.mubr.bf16.mxu1 %v3010_v20 }
 0x298   :  { %1705 = vmatmul.mubr.bf16.gmra.mrb[48].mxu1 %v3008_v18 }
 0x299   :  { %1714 = vmatprep.mubr.bf16.mxu1 %v3022_v61 }
 0x2a0   :  { %1715 = vmatmul.mubr.bf16.gmra.mrb[52].mxu1 %v3020_v59 }
 0x2a1   :  { %1724 = vmatprep.mubr.bf16.mxu1 %v1118_v37 }
 0x2a8   :  { %1725 = vmatmul.mubr.bf16.gmra.mrb[56].mxu1 %v3032_v35 }
 0x2a9   :  { %1734 = vmatprep.mubr.bf16.mxu1 %v1122_v19 }
 0x2b0   :  { %1735 = vmatmul.mubr.bf16.gmra.mrb[60].mxu1 %v1121_v12 }
 0x34b   :  { %v1666_v5 = vpop.f32.mrb[32].mxu1 }
 0x34c   :  { %v2285_v39 = vadd.f32 %v1666_v5, %v3059_v26  ;;  %v1668_v41 = vpop.f32.mrb[33].mxu1 }
 0x34d   :  { %v2286_v18 = vadd.f32 %v1668_v41, %v3062_v2  ;;  %v1670_v20 = vpop.f32.mrb[34].mxu1 }
 0x34e   :  { %v2287_v59 = vadd.f32 %v1670_v20, %v3059_v26  ;;  %v1672_v61 = vpop.f32.mrb[35].mxu1  ;;  %v1745_v43 = vmax.f32 %v2285_v39, 0.0 }
 0x34f   :  { %v2288_v22 = vadd.f32 %v1672_v61, %v3062_v2  ;;  %v1746_v25 = vmax.f32 %v2286_v18, 0.0 }
 0x350   :  { %v1747_v24 = vmax.f32 %v2287_v59, 0.0 }
 0x351   :  { %v1748_v44 = vmax.f32 %v2288_v22, 0.0 }
 0x352   :  { %v1777_v27 = vpack.c.bf16 %v1747_v24, %v1745_v43 }
 0x353   :  { %v1778_v28 = vpack.c.bf16 %v1748_v44, %v1746_v25  ;;  %v1676_v46 = vpop.f32.mrb[36].mxu1 }
 0x354   :  { %v2289_v29 = vadd.f32 %v1676_v46, %v3059_v26  ;;  %v1678_v30 = vpop.f32.mrb[37].mxu1 }
 0x355   :  { %v2290_v31 = vadd.f32 %v1678_v30, %v3062_v2  ;;  %v1680_v32 = vpop.f32.mrb[38].mxu1  ;;  %1960 = vmatprep.mubr.bf16.mxu0 %v1778_v28 }
 0x356   :  { %v2291_v33 = vadd.f32 %v1680_v32, %v3059_v26  ;;  %v1682_v34 = vpop.f32.mrb[39].mxu1  ;;  %1961 = vmatmul.mubr.bf16.vlgmr.msra.gmra.mrb[64].mxu0 %v1777_v27  ;;  %v1749_v36 = vmax.f32 %v2289_v29, 0.0 }
 0x357   :  { %v2292_v35 = vadd.f32 %v1682_v34, %v3062_v2  ;;  %v1750_v38 = vmax.f32 %v2290_v31, 0.0 }
 0x358   :  { %v1751_v37 = vmax.f32 %v2291_v33, 0.0 }
 0x359   :  { %v1752_v40 = vmax.f32 %v2292_v35, 0.0 }
 0x35a   :  { %v1779_v0 = vpack.c.bf16 %v1751_v37, %v1749_v36 }
 0x35b   :  { %v1780_v42 = vpack.c.bf16 %v1752_v40, %v1750_v38  ;;  %v1686_v45 = vpop.f32.mrb[40].mxu1 }
 0x35c   :  { %v2293_v50 = vadd.f32 %v1686_v45, %v3059_v26  ;;  %v1688_v51 = vpop.f32.mrb[41].mxu1 }
 0x35d   :  { %v2294_v53 = vadd.f32 %v1688_v51, %v3062_v2  ;;  %v1690_v54 = vpop.f32.mrb[42].mxu1  ;;  %1968 = vmatprep.mubr.bf16.mxu0 %v1780_v42 }
 0x35e   :  { %v2295_v55 = vadd.f32 %v1690_v54, %v3059_v26  ;;  %v1692_v56 = vpop.f32.mrb[43].mxu1  ;;  %1969 = vmatmul.mubr.bf16.gmra.mrb[68].mxu0 %v1779_v0  ;;  %v1753_v58 = vmax.f32 %v2293_v50, 0.0 }
 0x35f   :  { %v2296_v57 = vadd.f32 %v1692_v56, %v3062_v2  ;;  %v1754_v62 = vmax.f32 %v2294_v53, 0.0 }
 0x360   :  { %v1755_v60 = vmax.f32 %v2295_v55, 0.0 }
 0x361   :  { %v1756_v63 = vmax.f32 %v2296_v57, 0.0 }
 0x362   :  { %v1781_v1 = vpack.c.bf16 %v1755_v60, %v1753_v58 }
 0x363   :  { %v1782_v3 = vpack.c.bf16 %v1756_v63, %v1754_v62  ;;  %v1696_v4 = vpop.f32.mrb[44].mxu1 }
 0x364   :  { %v2297_v6 = vadd.f32 %v1696_v4, %v3059_v26  ;;  %v1698_v47 = vpop.f32.mrb[45].mxu1 }
 0x365   :  { %v2298_v7 = vadd.f32 %v1698_v47, %v3062_v2  ;;  %v1700_v8 = vpop.f32.mrb[46].mxu1  ;;  %1976 = vmatprep.mubr.bf16.mxu0 %v1782_v3 }
 0x366   :  { %v2299_v48 = vadd.f32 %v1700_v8, %v3059_v26  ;;  %v1702_v9 = vpop.f32.mrb[47].mxu1  ;;  %1977 = vmatmul.mubr.bf16.gmra.mrb[72].mxu0 %v1781_v1  ;;  %v1757_v13 = vmax.f32 %v2297_v6, 0.0 }
 0x367   :  { %v2300_v10 = vadd.f32 %v1702_v9, %v3062_v2  ;;  %v1758_v14 = vmax.f32 %v2298_v7, 0.0 }
 0x368   :  { %v1759_v11 = vmax.f32 %v2299_v48, 0.0 }
 0x369   :  { %v1760_v12 = vmax.f32 %v2300_v10, 0.0 }
 0x36a   :  { %v1783_v17 = vpack.c.bf16 %v1759_v11, %v1757_v13  ;;  %v3099_v11 = vld [vmem:[%s3140_s8] ss:$0 sm:$0xff]  ;;  %s2746_s8 = smov [#allocation11]  }
 0x36b   :  { %v1784_v19 = vpack.c.bf16 %v1760_v12, %v1758_v14  ;;  %v1706_v15 = vpop.f32.mrb[48].mxu1  ;;  %s2046_s14 = sshll.u32 %s2746_s8, 4  ;;  %s2047_s14 = int_to_ptr.vmem [resolvable:$true] %s2046_s14 }
 0x36c   :  { %v2301_v16 = vadd.f32 %v1706_v15, %v3059_v26  ;;  %v1708_v21 = vpop.f32.mrb[49].mxu1  ;;  %s2704_s0 = scalar_lea.vmem %s2047_s14, 2048  ;;  %p2709_p13 = scmp.lt.s32.totalorder %s2047_s14, %s2047_s14 }
 0x36d   :  { %v2302_v49 = vadd.f32 %v1708_v21, %v3062_v2  ;;  %v1710_v52 = vpop.f32.mrb[50].mxu1  ;;  %1984 = vmatprep.mubr.bf16.mxu0 %v1784_v19  ;;  %p2705_p12 = scmp.ne.s32.totalorder %s2047_s14, %s2704_s0  ;;  %p2710_p0 = scmp.lt.s32.totalorder %s2704_s0, %s2704_s0 }
 0x36e   :  { %v2303_v23 = vadd.f32 %v1710_v52, %v3059_v26  ;;  %v1712_v5 = vpop.f32.mrb[51].mxu1  ;;  %1985 = vmatmul.mubr.bf16.gmra.mrb[76].mxu0 %v1783_v17  ;;  %v1761_v41 = vmax.f32 %v2301_v16, 0.0 }
 0x36f   :  { %v2304_v39 = vadd.f32 %v1712_v5, %v3062_v2  ;;  %v1762_v20 = vmax.f32 %v2302_v49, 0.0  ;;  %p2711_p1 = por %p2710_p0, %p2709_p13 }
 0x370   :  { %v1763_v18 = vmax.f32 %v2303_v23, 0.0 }
 0x371   :  { %v1764_v59 = vmax.f32 %v2304_v39, 0.0  ;;  %p2712_p2 = pnand %p2711_p1, %p2705_p12 }
 0x372   :  { %v1785_v61 = vpack.c.bf16 %v1763_v18, %v1761_v41 }
 0x373   :  { %v1786_v22 = vpack.c.bf16 %v1764_v59, %v1762_v20  ;;  %v1716_v43 = vpop.f32.mrb[52].mxu1 }
 0x374   :  { %v2305_v24 = vadd.f32 %v1716_v43, %v3059_v26  ;;  %v1718_v25 = vpop.f32.mrb[53].mxu1 }
 0x375   :  { %v2306_v44 = vadd.f32 %v1718_v25, %v3062_v2  ;;  %v1720_v27 = vpop.f32.mrb[54].mxu1  ;;  %1992 = vmatprep.mubr.bf16.mxu0 %v1786_v22 }
 0x376   :  { %v2307_v28 = vadd.f32 %v1720_v27, %v3059_v26  ;;  %v1722_v46 = vpop.f32.mrb[55].mxu1  ;;  %1993 = vmatmul.mubr.bf16.gmra.mrb[80].mxu0 %v1785_v61  ;;  %v1765_v30 = vmax.f32 %v2305_v24, 0.0 }
 0x377   :  { %v2308_v29 = vadd.f32 %v1722_v46, %v3062_v2  ;;  %v1766_v32 = vmax.f32 %v2306_v44, 0.0 }
 0x378   :  { %v1767_v31 = vmax.f32 %v2307_v28, 0.0 }
 0x379   :  { %v1768_v33 = vmax.f32 %v2308_v29, 0.0 }
 0x37a   :  { %v1787_v34 = vpack.c.bf16 %v1767_v31, %v1765_v30 }
 0x37b   :  { %v1788_v35 = vpack.c.bf16 %v1768_v33, %v1766_v32  ;;  %v1726_v36 = vpop.f32.mrb[56].mxu1 }
 0x37c   :  { %v2309_v37 = vadd.f32 %v1726_v36, %v3059_v26  ;;  %v1728_v38 = vpop.f32.mrb[57].mxu1 }
 0x37d   :  { %v2310_v40 = vadd.f32 %v1728_v38, %v3062_v2  ;;  %v1730_v0 = vpop.f32.mrb[58].mxu1  ;;  %2000 = vmatprep.mubr.bf16.mxu0 %v1788_v35 }
 0x37e   :  { %v2311_v42 = vadd.f32 %v1730_v0, %v3059_v26  ;;  %v1732_v45 = vpop.f32.mrb[59].mxu1  ;;  %2001 = vmatmul.mubr.bf16.gmra.mrb[84].mxu0 %v1787_v34  ;;  %v1769_v51 = vmax.f32 %v2309_v37, 0.0 }
 0x37f   :  { %v2312_v50 = vadd.f32 %v1732_v45, %v3062_v2  ;;  %v1770_v54 = vmax.f32 %v2310_v40, 0.0 }
 0x380   :  { %v1771_v53 = vmax.f32 %v2311_v42, 0.0 }
 0x381   :  { %v1772_v55 = vmax.f32 %v2312_v50, 0.0 }
 0x382   :  { %v1789_v56 = vpack.c.bf16 %v1771_v53, %v1769_v51 }
 0x383   :  { %v1790_v57 = vpack.c.bf16 %v1772_v55, %v1770_v54  ;;  %v1736_v58 = vpop.f32.mrb[60].mxu1 }
 0x384   :  { %v2313_v60 = vadd.f32 %v1736_v58, %v3059_v26  ;;  %v1738_v62 = vpop.f32.mrb[61].mxu1 }
 0x385   :  { %v2314_v63 = vadd.f32 %v1738_v62, %v3062_v2  ;;  %v1740_v1 = vpop.f32.mrb[62].mxu1  ;;  %2008 = vmatprep.mubr.bf16.mxu0 %v1790_v57 }
 0x386   :  { %v2315_v3 = vadd.f32 %v1740_v1, %v3059_v26  ;;  %v1742_v4 = vpop.f32.mrb[63].mxu1  ;;  %2009 = vmatmul.mubr.bf16.gmra.mrb[88].mxu0 %v1789_v56  ;;  %v1773_v47 = vmax.f32 %v2313_v60, 0.0 }
 0x387   :  { %v2316_v6 = vadd.f32 %v1742_v4, %v3062_v2  ;;  %v1774_v8 = vmax.f32 %v2314_v63, 0.0 }
 0x388   :  { %v1775_v7 = vmax.f32 %v2315_v3, 0.0 }
 0x389   :  { %v1776_v48 = vmax.f32 %v2316_v6, 0.0 }
 0x38a   :  { %v1791_v9 = vpack.c.bf16 %v1775_v7, %v1773_v47 }
 0x38b   :  { %v1792_v10 = vpack.c.bf16 %v1776_v48, %v1774_v8 }
 0x38d   :  { %2016 = vmatprep.mubr.bf16.mxu0 %v1792_v10 }
 0x38e   :  { %2017 = vmatmul.mubr.bf16.gmra.mrb[92].mxu0 %v1791_v9 }
 0x429   :  { %v2237_v13 = vpop.f32.mrb[64].mxu0 }
 0x42a   :  { %v2238_v14 = vpop.f32.mrb[65].mxu0 }
 0x42b   :  { %v2239_v26 = vadd.f32 %v2238_v14, %v2237_v13  ;;  %v2240_v12 = vpop.f32.mrb[66].mxu0 }
 0x42c   :  { %v2241_v17 = vpop.f32.mrb[67].mxu0 }
 0x42d   :  { %v1963_v2 = vadd.f32 %v2239_v26, %v3099_v11  ;;  %v2242_v19 = vadd.f32 %v2241_v17, %v2240_v12 }
 0x42f   :  { %2025 = vst [vmem:[#allocation11] sm:$0xff] %v1963_v2  ;;  %v1966_v15 = vadd.f32 %v2242_v19, %v3099_v11 }
 0x431   :  { %2026 = vst [vmem:[#allocation11 + $0x8] sm:$0xff] %v1966_v15  ;;  %v2243_v16 = vpop.f32.mrb[68].mxu0 }
 0x432   :  { %v2244_v21 = vpop.f32.mrb[69].mxu0 }
 0x433   :  { %v2245_v49 = vadd.f32 %v2244_v21, %v2243_v16  ;;  %v2246_v52 = vpop.f32.mrb[70].mxu0 }
 0x434   :  { %v2247_v23 = vpop.f32.mrb[71].mxu0 }
 0x435   :  { %v1971_v5 = vadd.f32 %v2245_v49, %v3099_v11  ;;  %v2248_v39 = vadd.f32 %v2247_v23, %v2246_v52 }
 0x437   :  { %2027 = vst [vmem:[#allocation11 + $0x10] sm:$0xff] %v1971_v5  ;;  %v1974_v41 = vadd.f32 %v2248_v39, %v3099_v11 }
 0x439   :  { %2028 = vst [vmem:[#allocation11 + $0x18] sm:$0xff] %v1974_v41  ;;  %v2249_v18 = vpop.f32.mrb[72].mxu0 }
 0x43a   :  { %v2250_v20 = vpop.f32.mrb[73].mxu0 }
 0x43b   :  { %v2251_v59 = vadd.f32 %v2250_v20, %v2249_v18  ;;  %v2252_v61 = vpop.f32.mrb[74].mxu0 }
 0x43c   :  { %v2253_v22 = vpop.f32.mrb[75].mxu0 }
 0x43d   :  { %v1979_v43 = vadd.f32 %v2251_v59, %v3099_v11  ;;  %v2254_v24 = vadd.f32 %v2253_v22, %v2252_v61 }
 0x43f   :  { %2029 = vst [vmem:[#allocation11 + $0x20] sm:$0xff] %v1979_v43  ;;  %v1982_v25 = vadd.f32 %v2254_v24, %v3099_v11 }
 0x441   :  { %2030 = vst [vmem:[#allocation11 + $0x28] sm:$0xff] %v1982_v25  ;;  %v2255_v44 = vpop.f32.mrb[76].mxu0 }
 0x442   :  { %v2256_v27 = vpop.f32.mrb[77].mxu0 }
 0x443   :  { %v2257_v28 = vadd.f32 %v2256_v27, %v2255_v44  ;;  %v2258_v46 = vpop.f32.mrb[78].mxu0 }
 0x444   :  { %v2259_v29 = vpop.f32.mrb[79].mxu0 }
 0x445   :  { %v1987_v30 = vadd.f32 %v2257_v28, %v3099_v11  ;;  %v2260_v31 = vadd.f32 %v2259_v29, %v2258_v46 }
 0x447   :  { %2031 = vst [vmem:[#allocation11 + $0x30] sm:$0xff] %v1987_v30  ;;  %v1990_v32 = vadd.f32 %v2260_v31, %v3099_v11 }
 0x449   :  { %2032 = vst [vmem:[#allocation11 + $0x38] sm:$0xff] %v1990_v32  ;;  %v2261_v33 = vpop.f32.mrb[80].mxu0 }
 0x44a   :  { %v2262_v34 = vpop.f32.mrb[81].mxu0 }
 0x44b   :  { %v2263_v35 = vadd.f32 %v2262_v34, %v2261_v33  ;;  %v2264_v36 = vpop.f32.mrb[82].mxu0 }
 0x44c   :  { %v2265_v37 = vpop.f32.mrb[83].mxu0 }
 0x44d   :  { %v1995_v38 = vadd.f32 %v2263_v35, %v3099_v11  ;;  %v2266_v40 = vadd.f32 %v2265_v37, %v2264_v36 }
 0x44f   :  { %2033 = vst [vmem:[#allocation11 + $0x40] sm:$0xff] %v1995_v38  ;;  %v1998_v0 = vadd.f32 %v2266_v40, %v3099_v11 }
 0x451   :  { %2034 = vst [vmem:[#allocation11 + $0x48] sm:$0xff] %v1998_v0  ;;  %v2267_v42 = vpop.f32.mrb[84].mxu0 }
 0x452   :  { %v2268_v45 = vpop.f32.mrb[85].mxu0 }
 0x453   :  { %v2269_v50 = vadd.f32 %v2268_v45, %v2267_v42  ;;  %v2270_v51 = vpop.f32.mrb[86].mxu0 }
 0x454   :  { %v2271_v53 = vpop.f32.mrb[87].mxu0 }
 0x455   :  { %v2003_v54 = vadd.f32 %v2269_v50, %v3099_v11  ;;  %v2272_v55 = vadd.f32 %v2271_v53, %v2270_v51 }
 0x457   :  { %2035 = vst [vmem:[#allocation11 + $0x50] sm:$0xff] %v2003_v54  ;;  %v2006_v56 = vadd.f32 %v2272_v55, %v3099_v11 }
 0x459   :  { %2036 = vst [vmem:[#allocation11 + $0x58] sm:$0xff] %v2006_v56  ;;  %v2273_v57 = vpop.f32.mrb[88].mxu0 }
 0x45a   :  { %v2274_v58 = vpop.f32.mrb[89].mxu0 }
 0x45b   :  { %v2275_v60 = vadd.f32 %v2274_v58, %v2273_v57  ;;  %v2276_v62 = vpop.f32.mrb[90].mxu0 }
 0x45c   :  { %v2277_v63 = vpop.f32.mrb[91].mxu0 }
 0x45d   :  { %v2011_v1 = vadd.f32 %v2275_v60, %v3099_v11  ;;  %v2278_v3 = vadd.f32 %v2277_v63, %v2276_v62 }
 0x45f   :  { %2037 = vst [vmem:[#allocation11 + $0x60] sm:$0xff] %v2011_v1  ;;  %v2014_v4 = vadd.f32 %v2278_v3, %v3099_v11 }
 0x461   :  { %2038 = vst [vmem:[#allocation11 + $0x68] sm:$0xff] %v2014_v4  ;;  %v2279_v6 = vpop.f32.mrb[92].mxu0 }
 0x462   :  { %v2280_v47 = vpop.f32.mrb[93].mxu0 }
 0x463   :  { %v2281_v7 = vadd.f32 %v2280_v47, %v2279_v6  ;;  %v2282_v8 = vpop.f32.mrb[94].mxu0 }
 0x464   :  { %v2283_v48 = vpop.f32.mrb[95].mxu0 }
 0x465   :  { %v2019_v9 = vadd.f32 %v2281_v7, %v3099_v11  ;;  %v2284_v10 = vadd.f32 %v2283_v48, %v2282_v8 }
 0x467   :  { %2039 = vst [vmem:[#allocation11 + $0x70] sm:$0xff] %v2019_v9  ;;  %v2022_v13 = vadd.f32 %v2284_v10, %v3099_v11 }
 0x469   :  { %2040 = vst [vmem:[#allocation11 + $0x78] sm:$0xff] %v2022_v13 }
 0x46a   :  { %2715 = shalt.err (!%p2712_p2)
}
 0x46b   :  { %s2716_s18 = scalar_lea.hbm %s3141_s9, 2048 }
 0x46c   :  { %p2717_p3 = scmp.ne.s32.totalorder %s3141_s9, %s2716_s18  ;;  %p2720_p4 = scmp.lt.u32.totalorder %s2716_s18, %s3141_s9 }
 0x46e   :  { %p2722_p5 = pnand %p2720_p4, %p2717_p3 }
 0x470   :  { %2725 = shalt.err (!%p2722_p5)
}
 0x471   :  { %2052 = dma.vmem_to_hbm [thread:$0]  %s2047_s14, 2048, %s3141_s9, [#allocation4], %s2736_s21, %s2736_s21, %s2737_s22  }
 0x472   :  { %2732 = dma.done.wait [#allocation4], 2048  }
 0x473   :  { %2733 = vsyncadd [#allocation4], 4294965248 }
 0x474   :  { %2056 = vsyncpa [#allocation3], 1 }
 0x475   :  { %2057 = vsyncpa [#allocation6], 1 }
 0x476   :  { %2058 = vsyncpa [#allocation9], 1 }
 0x477   :  { %2059 = vsyncpa [#allocation4], 1 }

</bundles_post_ra>
